<compile_context>
chip_gen: v7x
topology: tpu7x:2x2x1
jax: 0.10.0
libtpu: 0.0.40
codegen_flags: <defaults>
</compile_context>

<pallas_src>
import jax
import jax.numpy as jnp
from jax import lax
from jax.experimental import pallas as pl
from jax.experimental.pallas import tpu as pltpu

# ---- small, self-consistent configuration ----
INPUT_SIZE = 8          # "61" in the original module, shrunk
HIDDEN_SIZE = 32        # "1024" shrunk
LATENT_SIZE = 16        # "512" shrunk
NUM_LAYERS = 2
NUM_EMBEDDINGS = 4
SEQ_LENGTH = 4          # "16" shrunk
MAX_SEQ_LENGTH = NUM_EMBEDDINGS * SEQ_LENGTH
BATCH = 2
MB = NUM_EMBEDDINGS * BATCH   # decoder "mega-batch": segments stacked into the batch dim

H = HIDDEN_SIZE
H2 = 2 * H
H3 = 3 * H

# Packed weight-slab lane offsets.  Each fused block is padded to a 128-lane boundary so every
# in-kernel weight slice starts on a lane-tile boundary (layout-clean, one-time slices).
_WC0F_OFF, _WC0F_N = 0, 256      # [cw1 | cu0]  (192 valid lanes)
_WC1F_OFF, _WC1F_N = 256, 128    # [cew | cu1]  (112 valid lanes)
_WD0F_OFF, _WD0F_N = 384, 256    # [dw1 | du0]  (192 valid lanes)
_WD1F_OFF, _WD1F_N = 640, 128    # [du1 | ow ]  (104 valid lanes)
_WH_LANES = 768

_WI_CW0_OFF = 0                  # cw0  (LATENT, 3H)            -> lanes   0: 96
_WI_DW0E_OFF = 128               # dw0e (LATENT, 3H)            -> lanes 128:224
_WI_DW0X_OFF = 256               # dw0x (K padded to LATENT,3H) -> lanes 256:352
_WI_LANES = 384


def _gru_cell(xg, hg, b_hn, h):
    """PyTorch nn.GRU cell, gate order (r, z, n).

    xg   : (M, 3H) x-side pre-activation with b_ih AND the r/z thirds of b_hh folded in.
    hg   : (M, 3H) = h @ W_hh^T (bias-free).
    b_hn : (M, H)  n-third of b_hh (pre-broadcast).
    One fused sigmoid over the (r, z) halves -> 2 EUP pushes per cell instead of 3.
    """
    rz = jax.nn.sigmoid(xg[:, :H2] + hg[:, :H2])
    n = jnp.tanh(xg[:, H2:] + rz[:, :H] * (hg[:, H2:] + b_hn))
    z = rz[:, H:]
    return (1.0 - z) * n + z * h


def hier_gru_decoder_kernel(dec_in_ref, latent_ref, h0_ref, hdec_ref,
                            wh_ref, wi_ref, bias_ref,
                            out_ref,
                            e_scratch, xg_scratch, fused_scratch):
    f32 = jnp.float32

    # ---- unpack the packed parameter slabs (static slices, hoisted out of all loops) ----
    wh = wh_ref[...]
    wc0f = wh[:, _WC0F_OFF:_WC0F_OFF + _WC0F_N]      # (H, 256): [cw1 | cu0 | 0]
    wc1f = wh[:, _WC1F_OFF:_WC1F_OFF + _WC1F_N]      # (H, 128): [cew | cu1 | 0]
    wd0f = wh[:, _WD0F_OFF:_WD0F_OFF + _WD0F_N]      # (H, 256): [dw1 | du0 | 0]
    wd1f = wh[:, _WD1F_OFF:_WD1F_OFF + _WD1F_N]      # (H, 128): [du1 | ow  | 0]

    wi = wi_ref[...]
    w_c0 = wi[:, _WI_CW0_OFF:_WI_CW0_OFF + H3]       # (LATENT, 3H)
    w_d0e = wi[:, _WI_DW0E_OFF:_WI_DW0E_OFF + H3]    # (LATENT, 3H)
    w_d0x = wi[:, _WI_DW0X_OFF:_WI_DW0X_OFF + H3]    # (LATENT, 3H), rows >= INPUT_SIZE are zero

    bias = bias_ref[...]                             # (8, 128)
    b_c0 = bias[0:1, 0:H3]; b_c0_hn = bias[0:1, H3:H3 + H]
    b_c1 = bias[1:2, 0:H3]; b_c1_hn = bias[1:2, H3:H3 + H]
    b_d0 = bias[2:3, 0:H3]; b_d0_hn = bias[2:3, H3:H3 + H]
    b_d1 = bias[3:4, 0:H3]; b_d1_hn = bias[3:4, H3:H3 + H]
    ceb = bias[4:5, 0:LATENT_SIZE]
    ob = bias[4:5, LATENT_SIZE:LATENT_SIZE + INPUT_SIZE]

    # Pre-broadcast biases used inside unrolled loops (JAX does not CSE broadcast_in_dim).
    b_c1_b = jnp.broadcast_to(b_c1, (BATCH, H3))
    b_c0_hn_b = jnp.broadcast_to(b_c0_hn, (BATCH, H))
    b_c1_hn_b = jnp.broadcast_to(b_c1_hn, (BATCH, H))
    ceb_b = jnp.broadcast_to(ceb, (BATCH, LATENT_SIZE))
    b_d1_b = jnp.broadcast_to(b_d1, (MB, H3))
    b_d0_hn_b = jnp.broadcast_to(b_d0_hn, (MB, H))
    b_d1_hn_b = jnp.broadcast_to(b_d1_hn, (MB, H))

    # ---------------- Phase 1: conductor GRU (serial over segments) ----------------
    # The conductor input is the same `latent` every segment -> its gate contribution
    # (with b_ih and the r/z part of b_hh) is hoisted out of the segment loop.
    xg_c0 = jnp.dot(latent_ref[...], w_c0, preferred_element_type=f32) + b_c0     # (B, 3H)

    h_c0 = h0_ref[0]
    h_c1 = h0_ref[1]
    # Loop-carried h-gate pre-activations: the NEXT segment's `h @ W_hh` comes out of the
    # current segment's fused push; the initial ones are seeded from h0 via the same slabs.
    hg_c0 = jnp.dot(h_c0, wc0f, preferred_element_type=f32)[:, H3:2 * H3]
    hg_c1 = jnp.dot(h_c1, wc1f, preferred_element_type=f32)[:, LATENT_SIZE:LATENT_SIZE + H3]

    # Python loop on purpose: the e_scratch stores below need STATIC sublane offsets (safe
    # lowering); 4 iterations of tiny ops, so live-range pressure is not a concern.
    for seg in range(NUM_EMBEDDINGS):
        h_c0 = _gru_cell(xg_c0, hg_c0, b_c0_hn_b, h_c0)
        f0 = jnp.dot(h_c0, wc0f, preferred_element_type=f32)       # (B, 256): [xg1 | hg_c0']
        h_c1 = _gru_cell(f0[:, :H3] + b_c1_b, hg_c1, b_c1_hn_b, h_c1)
        f1 = jnp.dot(h_c1, wc1f, preferred_element_type=f32)       # (B, 128): [emb | hg_c1']
        hg_c0 = f0[:, H3:2 * H3]
        hg_c1 = f1[:, LATENT_SIZE:LATENT_SIZE + H3]
        # conductor_embeddings = tanh(Linear(hidden -> latent)); segments stack into MB rows.
        e_scratch[seg * BATCH:(seg + 1) * BATCH, :] = jnp.tanh(f1[:, :LATENT_SIZE] + ceb_b)

    # ---------------- Phase 2: decoder GRU, segments mega-batched (MB rows) ----------------
    # Hoist the whole layer-0 x-side gate contribution out of the serial recurrence:
    # the embedding part is constant per segment; the teacher-forced input part is computed
    # for all SEQ_LENGTH steps up front (independent of the recurrence, overlaps with it).
    eg = jnp.dot(e_scratch[...], w_d0e, preferred_element_type=f32) + b_d0        # (MB, 3H)
    for t in range(SEQ_LENGTH):
        xg_scratch[t] = jnp.dot(dec_in_ref[t], w_d0x, preferred_element_type=f32) + eg

    h_d0 = hdec_ref[0]
    h_d1 = hdec_ref[1]
    hg_d0 = jnp.dot(h_d0, wd0f, preferred_element_type=f32)[:, H3:2 * H3]
    hg_d1 = jnp.dot(h_d1, wd1f, preferred_element_type=f32)[:, :H3]

    def step(t, carry):
        h_d0, h_d1, hg_d0, hg_d1 = carry
        h_d0 = _gru_cell(xg_scratch[t], hg_d0, b_d0_hn_b, h_d0)
        f0 = jnp.dot(h_d0, wd0f, preferred_element_type=f32)       # (MB, 256): [xg1 | hg_d0']
        h_d1 = _gru_cell(f0[:, :H3] + b_d1_b, hg_d1, b_d1_hn_b, h_d1)
        f1 = jnp.dot(h_d1, wd1f, preferred_element_type=f32)       # (MB, 128): [hg_d1' | logits]
        fused_scratch[t] = f1      # dense 128-lane store; softmax + output are deferred
        return (h_d0, h_d1, f0[:, H3:2 * H3], f1[:, :H3])

    lax.fori_loop(0, SEQ_LENGTH, step, (h_d0, h_d1, hg_d0, hg_d1), unroll=True)

    # One batched softmax over all (SEQ, MB, INPUT) logits + a single consolidated store.
    logits = fused_scratch[...][:, :, H3:H3 + INPUT_SIZE] + ob
    m = jnp.max(logits, axis=-1, keepdims=True)
    p = jnp.exp(logits - m)
    out_ref[...] = p / jnp.sum(p, axis=-1, keepdims=True)


def pack_params(p):
    """Pack the 25 PyTorch-layout parameters into 3 VMEM slabs (fused + lane-padded)."""
    def pad_n(w, n):
        return jnp.pad(w, ((0, 0), (0, n - w.shape[1])))

    wh = jnp.concatenate([
        pad_n(jnp.concatenate([p['cw1'], p['cu0']], axis=1), _WC0F_N),
        pad_n(jnp.concatenate([p['cew'], p['cu1']], axis=1), _WC1F_N),
        pad_n(jnp.concatenate([p['dw1'], p['du0']], axis=1), _WD0F_N),
        pad_n(jnp.concatenate([p['du1'], p['ow']], axis=1), _WD1F_N),
    ], axis=1)                                                        # (H, 768)

    dw0x_k = jnp.pad(p['dw0x'], ((0, LATENT_SIZE - INPUT_SIZE), (0, 0)))   # (LATENT, 3H)
    wi = jnp.concatenate([pad_n(p['cw0'], 128), pad_n(p['dw0e'], 128),
                          pad_n(dw0x_k, 128)], axis=1)                # (LATENT, 384)

    def bias_row(b_ih, b_hh):
        # Fold the r/z thirds of b_hh into b_ih; keep b_hn separate -> one (1, 4H)=(1,128) row.
        comb = b_ih + jnp.concatenate(
            [b_hh[:, :H2], jnp.zeros((1, H), jnp.float32)], axis=1)
        return jnp.concatenate([comb, b_hh[:, H2:]], axis=1)

    out_row = jnp.pad(jnp.concatenate([p['ceb'], p['ob']], axis=1),
                      ((0, 0), (0, 128 - LATENT_SIZE - INPUT_SIZE)))
    bias = jnp.concatenate([
        bias_row(p['cbi0'], p['cbh0']),
        bias_row(p['cbi1'], p['cbh1']),
        bias_row(p['dbi0'], p['dbh0']),
        bias_row(p['dbi1'], p['dbh1']),
        out_row,
        jnp.zeros((3, 128), jnp.float32),
    ], axis=0)                                                        # (8, 128) = one tile
    return wh, wi, bias


def hierarchical_gru_decoder(target, latent, h0, hdec_init, params):
    """Wrapper: teacher-forcing forward. target (T,B,I) time-major, h0 (L,B,H)."""
    # Teacher-forced decoder inputs: prev_note at step idx is target[idx-1], zeros at idx=0.
    prev = jnp.concatenate(
        [jnp.zeros((1, BATCH, INPUT_SIZE), jnp.float32), target[:-1]], axis=0)
    # (MAX_SEQ, B, I) -> (SEQ, NUM_EMB*B, I): independent segments stacked into the batch dim.
    dec_in = prev.reshape(NUM_EMBEDDINGS, SEQ_LENGTH, BATCH, INPUT_SIZE) \
                 .transpose(1, 0, 2, 3).reshape(SEQ_LENGTH, MB, INPUT_SIZE)
    # Pad the feature dim to LATENT_SIZE to match the K-padded dw0x block (zero rows there).
    dec_in = jnp.pad(dec_in, ((0, 0), (0, 0), (0, LATENT_SIZE - INPUT_SIZE)))
    # (NUM_EMB, L, B, H) -> (L, NUM_EMB*B, H)
    hdec = hdec_init.transpose(1, 0, 2, 3).reshape(NUM_LAYERS, MB, HIDDEN_SIZE)

    wh, wi, bias = pack_params(params)

    vmem = pl.BlockSpec(memory_space=pltpu.MemorySpace.VMEM)
    inputs = (dec_in, latent, h0, hdec, wh, wi, bias)
    out_k = pl.pallas_call(
        hier_gru_decoder_kernel,
        out_shape=jax.ShapeDtypeStruct((SEQ_LENGTH, MB, INPUT_SIZE), jnp.float32),
        in_specs=[vmem] * len(inputs),
        out_specs=vmem,
        scratch_shapes=[
            pltpu.VMEM((MB, LATENT_SIZE), jnp.float32),          # conductor embeddings
            pltpu.VMEM((SEQ_LENGTH, MB, H3), jnp.float32),       # hoisted layer-0 x-gates
            pltpu.VMEM((SEQ_LENGTH, MB, _WD1F_N), jnp.float32),  # per-step fused [hg'|logits]
        ],
    )(*inputs)
    # (SEQ, NUM_EMB*B, I) -> (MAX_SEQ, B, I)
    return out_k.reshape(SEQ_LENGTH, NUM_EMBEDDINGS, BATCH, INPUT_SIZE) \
                .transpose(1, 0, 2, 3).reshape(MAX_SEQ_LENGTH, BATCH, INPUT_SIZE)


def init_params(key):
    """Deterministic params; shapes follow nn.GRU / nn.Linear, pre-transposed to (in, out)."""
    ks = jax.random.split(key, 21)
    scale = 1.0 / jnp.sqrt(H)

    def u(k, shape):
        return jax.random.uniform(k, shape, jnp.float32, -scale, scale)

    return dict(
        # conductor GRU layer 0 (input = latent)
        cw0=u(ks[0], (LATENT_SIZE, H3)),
        cu0=u(ks[1], (H, H3)),
        cbi0=u(ks[2], (1, H3)),
        cbh0=u(ks[3], (1, H3)),
        # conductor GRU layer 1
        cw1=u(ks[4], (H, H3)),
        cu1=u(ks[5], (H, H3)),
        cbi1=u(ks[6], (1, H3)),
        cbh1=u(ks[7], (1, H3)),
        # conductor_embeddings Linear(hidden -> latent)
        cew=u(ks[8], (H, LATENT_SIZE)),
        ceb=u(ks[9], (1, LATENT_SIZE)),
        # decoder GRU layer 0 (input = input_size + latent_size, W_ih split into two blocks)
        dw0x=u(ks[10], (INPUT_SIZE, H3)),
        dw0e=u(ks[11], (LATENT_SIZE, H3)),
        du0=u(ks[12], (H, H3)),
        dbi0=u(ks[13], (1, H3)),
        dbh0=u(ks[14], (1, H3)),
        # decoder GRU layer 1
        dw1=u(ks[15], (H, H3)),
        du1=u(ks[16], (H, H3)),
        dbi1=u(ks[17], (1, H3)),
        dbh1=u(ks[18], (1, H3)),
        # out Linear(hidden -> input_size)
        ow=u(ks[19], (H, INPUT_SIZE)),
        ob=u(ks[20], (1, INPUT_SIZE)),
    )


def reference_forward(target, latent, h0, hdec, p):
    """Pure-JAX reference mirroring the PyTorch forward (nn.GRU, full teacher forcing)."""
    def gru_cell(xg, h, u, bh):
        hg = h @ u + bh
        r = jax.nn.sigmoid(xg[:, :H] + hg[:, :H])
        z = jax.nn.sigmoid(xg[:, H:H2] + hg[:, H:H2])
        n = jnp.tanh(xg[:, H2:] + r * hg[:, H2:])
        return (1.0 - z) * n + z * h

    outs = []
    hc0, hc1 = h0[0], h0[1]
    prev = jnp.zeros((BATCH, INPUT_SIZE), jnp.float32)
    for emb in range(NUM_EMBEDDINGS):
        hc0 = gru_cell(latent @ p['cw0'] + p['cbi0'], hc0, p['cu0'], p['cbh0'])
        hc1 = gru_cell(hc0 @ p['cw1'] + p['cbi1'], hc1, p['cu1'], p['cbh1'])
        e = jnp.tanh(hc1 @ p['cew'] + p['ceb'])
        hd0, hd1 = hdec[emb, 0], hdec[emb, 1]
        for t in range(SEQ_LENGTH):
            idx = emb * SEQ_LENGTH + t
            xg = prev @ p['dw0x'] + e @ p['dw0e'] + p['dbi0']
            hd0 = gru_cell(xg, hd0, p['du0'], p['dbh0'])
            hd1 = gru_cell(hd0 @ p['dw1'] + p['dbi1'], hd1, p['du1'], p['dbh1'])
            outs.append(jax.nn.softmax(hd1 @ p['ow'] + p['ob'], axis=-1))
            prev = target[idx]          # teacher forcing
    return jnp.stack(outs, axis=0)


if __name__ == "__main__":
    key = jax.random.PRNGKey(0)
    k_par, k_tgt, k_lat, k_h0, k_hd = jax.random.split(key, 5)

    params = init_params(k_par)
    target = jax.random.normal(k_tgt, (MAX_SEQ_LENGTH, BATCH, INPUT_SIZE), jnp.float32)
    latent = jax.random.normal(k_lat, (BATCH, LATENT_SIZE), jnp.float32)
    h0 = jax.random.normal(k_h0, (NUM_LAYERS, BATCH, HIDDEN_SIZE), jnp.float32)
    # deterministic stand-in for the per-segment torch.randn decoder state init
    hdec_init = jax.random.normal(
        k_hd, (NUM_EMBEDDINGS, NUM_LAYERS, BATCH, HIDDEN_SIZE), jnp.float32)

    out = hierarchical_gru_decoder(target, latent, h0, hdec_init, params)
    out = jax.block_until_ready(out)

    ref = reference_forward(target, latent, h0, hdec_init, params)
    assert out.shape == (MAX_SEQ_LENGTH, BATCH, INPUT_SIZE)
    assert bool(jnp.allclose(out, ref, atol=2e-5, rtol=2e-5)), "mismatch vs pure-JAX reference"
    assert bool(jnp.allclose(out.sum(-1), 1.0, atol=1e-5)), "softmax rows must sum to 1"

    print("KERNEL_OK")
</pallas_src>

<mosaic_0001>
module attributes {stable_mosaic.version = 11 : i64} {
  func.func @hier_gru_decoder_kernel(%arg0: memref<4x8x16xf32, #tpu.memory_space<vmem>>, %arg1: memref<2x16xf32, #tpu.memory_space<vmem>>, %arg2: memref<2x2x32xf32, #tpu.memory_space<vmem>>, %arg3: memref<2x8x32xf32, #tpu.memory_space<vmem>>, %arg4: memref<32x768xf32, #tpu.memory_space<vmem>>, %arg5: memref<16x384xf32, #tpu.memory_space<vmem>>, %arg6: memref<8x128xf32, #tpu.memory_space<vmem>>, %arg7: memref<4x8x8xf32, #tpu.memory_space<vmem>>, %arg8: memref<8x16xf32, #tpu.memory_space<vmem>>, %arg9: memref<4x8x96xf32, #tpu.memory_space<vmem>>, %arg10: memref<4x8x128xf32, #tpu.memory_space<vmem>>) attributes {dimension_semantics = [], scalar_prefetch = 0 : i64, scratch_operands = 3 : i64, tpu.core_type = #tpu.core_type<tc>} {
    %c0 = arith.constant 0 : index
    %c0_0 = arith.constant 0 : index
    %0 = vector.load %arg4[%c0, %c0_0] : memref<32x768xf32, #tpu.memory_space<vmem>>, vector<32x768xf32>
    %1 = vector.extract_strided_slice %0 {offsets = [0, 0], sizes = [32, 256], strides = [1, 1]} : vector<32x768xf32> to vector<32x256xf32>
    %2 = vector.extract_strided_slice %0 {offsets = [0, 256], sizes = [32, 128], strides = [1, 1]} : vector<32x768xf32> to vector<32x128xf32>
    %3 = vector.extract_strided_slice %0 {offsets = [0, 384], sizes = [32, 256], strides = [1, 1]} : vector<32x768xf32> to vector<32x256xf32>
    %4 = vector.extract_strided_slice %0 {offsets = [0, 640], sizes = [32, 128], strides = [1, 1]} : vector<32x768xf32> to vector<32x128xf32>
    %c0_1 = arith.constant 0 : index
    %c0_2 = arith.constant 0 : index
    %5 = vector.load %arg5[%c0_1, %c0_2] : memref<16x384xf32, #tpu.memory_space<vmem>>, vector<16x384xf32>
    %6 = vector.extract_strided_slice %5 {offsets = [0, 0], sizes = [16, 96], strides = [1, 1]} : vector<16x384xf32> to vector<16x96xf32>
    %7 = vector.extract_strided_slice %5 {offsets = [0, 128], sizes = [16, 96], strides = [1, 1]} : vector<16x384xf32> to vector<16x96xf32>
    %8 = vector.extract_strided_slice %5 {offsets = [0, 256], sizes = [16, 96], strides = [1, 1]} : vector<16x384xf32> to vector<16x96xf32>
    %c0_3 = arith.constant 0 : index
    %c0_4 = arith.constant 0 : index
    %9 = vector.load %arg6[%c0_3, %c0_4] : memref<8x128xf32, #tpu.memory_space<vmem>>, vector<8x128xf32>
    %10 = vector.extract_strided_slice %9 {offsets = [0, 0], sizes = [1, 96], strides = [1, 1]} : vector<8x128xf32> to vector<1x96xf32>
    %11 = vector.extract_strided_slice %9 {offsets = [0, 96], sizes = [1, 32], strides = [1, 1]} : vector<8x128xf32> to vector<1x32xf32>
    %12 = vector.extract_strided_slice %9 {offsets = [1, 0], sizes = [1, 96], strides = [1, 1]} : vector<8x128xf32> to vector<1x96xf32>
    %13 = vector.extract_strided_slice %9 {offsets = [1, 96], sizes = [1, 32], strides = [1, 1]} : vector<8x128xf32> to vector<1x32xf32>
    %14 = vector.extract_strided_slice %9 {offsets = [2, 0], sizes = [1, 96], strides = [1, 1]} : vector<8x128xf32> to vector<1x96xf32>
    %15 = vector.extract_strided_slice %9 {offsets = [2, 96], sizes = [1, 32], strides = [1, 1]} : vector<8x128xf32> to vector<1x32xf32>
    %16 = vector.extract_strided_slice %9 {offsets = [3, 0], sizes = [1, 96], strides = [1, 1]} : vector<8x128xf32> to vector<1x96xf32>
    %17 = vector.extract_strided_slice %9 {offsets = [3, 96], sizes = [1, 32], strides = [1, 1]} : vector<8x128xf32> to vector<1x32xf32>
    %18 = vector.extract_strided_slice %9 {offsets = [4, 0], sizes = [1, 16], strides = [1, 1]} : vector<8x128xf32> to vector<1x16xf32>
    %19 = vector.extract_strided_slice %9 {offsets = [4, 16], sizes = [1, 8], strides = [1, 1]} : vector<8x128xf32> to vector<1x8xf32>
    %20 = vector.shape_cast %12 : vector<1x96xf32> to vector<1x96xf32>
    %21 = vector.broadcast %20 : vector<1x96xf32> to vector<2x96xf32>
    %22 = vector.shape_cast %11 : vector<1x32xf32> to vector<1x32xf32>
    %23 = vector.broadcast %22 : vector<1x32xf32> to vector<2x32xf32>
    %24 = vector.shape_cast %13 : vector<1x32xf32> to vector<1x32xf32>
    %25 = vector.broadcast %24 : vector<1x32xf32> to vector<2x32xf32>
    %26 = vector.shape_cast %18 : vector<1x16xf32> to vector<1x16xf32>
    %27 = vector.broadcast %26 : vector<1x16xf32> to vector<2x16xf32>
    %28 = vector.shape_cast %16 : vector<1x96xf32> to vector<1x96xf32>
    %29 = vector.broadcast %28 : vector<1x96xf32> to vector<8x96xf32>
    %30 = vector.shape_cast %15 : vector<1x32xf32> to vector<1x32xf32>
    %31 = vector.broadcast %30 : vector<1x32xf32> to vector<8x32xf32>
    %32 = vector.shape_cast %17 : vector<1x32xf32> to vector<1x32xf32>
    %33 = vector.broadcast %32 : vector<1x32xf32> to vector<8x32xf32>
    %c0_5 = arith.constant 0 : index
    %c0_6 = arith.constant 0 : index
    %34 = vector.load %arg1[%c0_5, %c0_6] : memref<2x16xf32, #tpu.memory_space<vmem>>, vector<2x16xf32>
    %cst = arith.constant dense<0.000000e+00> : vector<2x96xf32>
    %35 = tpu.matmul %34, %6, %cst {dimension_numbers = #tpu.dot_dimension_numbers<[1], [0], [0], [1], [0, 0, 1, 1], [], []>} : vector<2x16xf32>, vector<16x96xf32>, vector<2x96xf32> -> vector<2x96xf32>
    %36 = vector.broadcast %10 : vector<1x96xf32> to vector<2x96xf32>
    %37 = arith.addf %35, %36 : vector<2x96xf32>
    %c0_7 = arith.constant 0 : index
    %c0_8 = arith.constant 0 : index
    %c0_9 = arith.constant 0 : index
    %38 = vector.load %arg2[%c0_7, %c0_8, %c0_9] : memref<2x2x32xf32, #tpu.memory_space<vmem>>, vector<1x2x32xf32>
    %39 = vector.shape_cast %38 : vector<1x2x32xf32> to vector<2x32xf32>
    %c1 = arith.constant 1 : index
    %c0_10 = arith.constant 0 : index
    %c0_11 = arith.constant 0 : index
    %40 = vector.load %arg2[%c1, %c0_10, %c0_11] : memref<2x2x32xf32, #tpu.memory_space<vmem>>, vector<1x2x32xf32>
    %41 = vector.shape_cast %40 : vector<1x2x32xf32> to vector<2x32xf32>
    %cst_12 = arith.constant dense<0.000000e+00> : vector<2x256xf32>
    %42 = tpu.matmul %39, %1, %cst_12 {dimension_numbers = #tpu.dot_dimension_numbers<[1], [0], [0], [1], [0, 0, 1, 1], [], []>} : vector<2x32xf32>, vector<32x256xf32>, vector<2x256xf32> -> vector<2x256xf32>
    %43 = vector.extract_strided_slice %42 {offsets = [0, 96], sizes = [2, 96], strides = [1, 1]} : vector<2x256xf32> to vector<2x96xf32>
    %cst_13 = arith.constant dense<0.000000e+00> : vector<2x128xf32>
    %44 = tpu.matmul %41, %2, %cst_13 {dimension_numbers = #tpu.dot_dimension_numbers<[1], [0], [0], [1], [0, 0, 1, 1], [], []>} : vector<2x32xf32>, vector<32x128xf32>, vector<2x128xf32> -> vector<2x128xf32>
    %45 = vector.extract_strided_slice %44 {offsets = [0, 16], sizes = [2, 96], strides = [1, 1]} : vector<2x128xf32> to vector<2x96xf32>
    %46 = vector.extract_strided_slice %37 {offsets = [0, 0], sizes = [2, 64], strides = [1, 1]} : vector<2x96xf32> to vector<2x64xf32>
    %47 = vector.extract_strided_slice %43 {offsets = [0, 0], sizes = [2, 64], strides = [1, 1]} : vector<2x96xf32> to vector<2x64xf32>
    %48 = arith.addf %46, %47 : vector<2x64xf32>
    %49 = arith.negf %48 : vector<2x64xf32>
    %50 = math.exp %49 : vector<2x64xf32>
    %cst_14 = arith.constant 1.000000e+00 : f32
    %51 = vector.broadcast %cst_14 : f32 to vector<2x64xf32>
    %52 = arith.addf %51, %50 : vector<2x64xf32>
    %53 = arith.divf %51, %52 : vector<2x64xf32>
    %54 = vector.extract_strided_slice %37 {offsets = [0, 64], sizes = [2, 32], strides = [1, 1]} : vector<2x96xf32> to vector<2x32xf32>
    %55 = vector.extract_strided_slice %53 {offsets = [0, 0], sizes = [2, 32], strides = [1, 1]} : vector<2x64xf32> to vector<2x32xf32>
    %56 = vector.extract_strided_slice %43 {offsets = [0, 64], sizes = [2, 32], strides = [1, 1]} : vector<2x96xf32> to vector<2x32xf32>
    %57 = arith.addf %56, %23 : vector<2x32xf32>
    %58 = arith.mulf %55, %57 : vector<2x32xf32>
    %59 = arith.addf %54, %58 : vector<2x32xf32>
    %60 = math.tanh %59 : vector<2x32xf32>
    %61 = vector.extract_strided_slice %53 {offsets = [0, 32], sizes = [2, 32], strides = [1, 1]} : vector<2x64xf32> to vector<2x32xf32>
    %cst_15 = arith.constant 1.000000e+00 : f32
    %62 = vector.broadcast %cst_15 : f32 to vector<2x32xf32>
    %63 = arith.subf %62, %61 : vector<2x32xf32>
    %64 = arith.mulf %63, %60 : vector<2x32xf32>
    %65 = arith.mulf %61, %39 : vector<2x32xf32>
    %66 = arith.addf %64, %65 : vector<2x32xf32>
    %cst_16 = arith.constant dense<0.000000e+00> : vector<2x256xf32>
    %67 = tpu.matmul %66, %1, %cst_16 {dimension_numbers = #tpu.dot_dimension_numbers<[1], [0], [0], [1], [0, 0, 1, 1], [], []>} : vector<2x32xf32>, vector<32x256xf32>, vector<2x256xf32> -> vector<2x256xf32>
    %68 = vector.extract_strided_slice %67 {offsets = [0, 0], sizes = [2, 96], strides = [1, 1]} : vector<2x256xf32> to vector<2x96xf32>
    %69 = arith.addf %68, %21 : vector<2x96xf32>
    %70 = vector.extract_strided_slice %69 {offsets = [0, 0], sizes = [2, 64], strides = [1, 1]} : vector<2x96xf32> to vector<2x64xf32>
    %71 = vector.extract_strided_slice %45 {offsets = [0, 0], sizes = [2, 64], strides = [1, 1]} : vector<2x96xf32> to vector<2x64xf32>
    %72 = arith.addf %70, %71 : vector<2x64xf32>
    %73 = arith.negf %72 : vector<2x64xf32>
    %74 = math.exp %73 : vector<2x64xf32>
    %cst_17 = arith.constant 1.000000e+00 : f32
    %75 = vector.broadcast %cst_17 : f32 to vector<2x64xf32>
    %76 = arith.addf %75, %74 : vector<2x64xf32>
    %77 = arith.divf %75, %76 : vector<2x64xf32>
    %78 = vector.extract_strided_slice %69 {offsets = [0, 64], sizes = [2, 32], strides = [1, 1]} : vector<2x96xf32> to vector<2x32xf32>
    %79 = vector.extract_strided_slice %77 {offsets = [0, 0], sizes = [2, 32], strides = [1, 1]} : vector<2x64xf32> to vector<2x32xf32>
    %80 = vector.extract_strided_slice %45 {offsets = [0, 64], sizes = [2, 32], strides = [1, 1]} : vector<2x96xf32> to vector<2x32xf32>
    %81 = arith.addf %80, %25 : vector<2x32xf32>
    %82 = arith.mulf %79, %81 : vector<2x32xf32>
    %83 = arith.addf %78, %82 : vector<2x32xf32>
    %84 = math.tanh %83 : vector<2x32xf32>
    %85 = vector.extract_strided_slice %77 {offsets = [0, 32], sizes = [2, 32], strides = [1, 1]} : vector<2x64xf32> to vector<2x32xf32>
    %cst_18 = arith.constant 1.000000e+00 : f32
    %86 = vector.broadcast %cst_18 : f32 to vector<2x32xf32>
    %87 = arith.subf %86, %85 : vector<2x32xf32>
    %88 = arith.mulf %87, %84 : vector<2x32xf32>
    %89 = arith.mulf %85, %41 : vector<2x32xf32>
    %90 = arith.addf %88, %89 : vector<2x32xf32>
    %cst_19 = arith.constant dense<0.000000e+00> : vector<2x128xf32>
    %91 = tpu.matmul %90, %2, %cst_19 {dimension_numbers = #tpu.dot_dimension_numbers<[1], [0], [0], [1], [0, 0, 1, 1], [], []>} : vector<2x32xf32>, vector<32x128xf32>, vector<2x128xf32> -> vector<2x128xf32>
    %92 = vector.extract_strided_slice %67 {offsets = [0, 96], sizes = [2, 96], strides = [1, 1]} : vector<2x256xf32> to vector<2x96xf32>
    %93 = vector.extract_strided_slice %91 {offsets = [0, 16], sizes = [2, 96], strides = [1, 1]} : vector<2x128xf32> to vector<2x96xf32>
    %94 = vector.extract_strided_slice %91 {offsets = [0, 0], sizes = [2, 16], strides = [1, 1]} : vector<2x128xf32> to vector<2x16xf32>
    %95 = arith.addf %94, %27 : vector<2x16xf32>
    %96 = math.tanh %95 : vector<2x16xf32>
    %c0_20 = arith.constant 0 : index
    %c0_21 = arith.constant 0 : index
    %97 = vector.load %arg8[%c0_20, %c0_21] : memref<8x16xf32, #tpu.memory_space<vmem>>, vector<2x16xf32>
    tpu.vector_store %arg8[%c0_20, %c0_21], %96 {strides = array<i32>} : memref<8x16xf32, #tpu.memory_space<vmem>>, vector<2x16xf32>,
    %98 = vector.extract_strided_slice %37 {offsets = [0, 0], sizes = [2, 64], strides = [1, 1]} : vector<2x96xf32> to vector<2x64xf32>
    %99 = vector.extract_strided_slice %92 {offsets = [0, 0], sizes = [2, 64], strides = [1, 1]} : vector<2x96xf32> to vector<2x64xf32>
    %100 = arith.addf %98, %99 : vector<2x64xf32>
    %101 = arith.negf %100 : vector<2x64xf32>
    %102 = math.exp %101 : vector<2x64xf32>
    %cst_22 = arith.constant 1.000000e+00 : f32
    %103 = vector.broadcast %cst_22 : f32 to vector<2x64xf32>
    %104 = arith.addf %103, %102 : vector<2x64xf32>
    %105 = arith.divf %103, %104 : vector<2x64xf32>
    %106 = vector.extract_strided_slice %37 {offsets = [0, 64], sizes = [2, 32], strides = [1, 1]} : vector<2x96xf32> to vector<2x32xf32>
    %107 = vector.extract_strided_slice %105 {offsets = [0, 0], sizes = [2, 32], strides = [1, 1]} : vector<2x64xf32> to vector<2x32xf32>
    %108 = vector.extract_strided_slice %92 {offsets = [0, 64], sizes = [2, 32], strides = [1, 1]} : vector<2x96xf32> to vector<2x32xf32>
    %109 = arith.addf %108, %23 : vector<2x32xf32>
    %110 = arith.mulf %107, %109 : vector<2x32xf32>
    %111 = arith.addf %106, %110 : vector<2x32xf32>
    %112 = math.tanh %111 : vector<2x32xf32>
    %113 = vector.extract_strided_slice %105 {offsets = [0, 32], sizes = [2, 32], strides = [1, 1]} : vector<2x64xf32> to vector<2x32xf32>
    %cst_23 = arith.constant 1.000000e+00 : f32
    %114 = vector.broadcast %cst_23 : f32 to vector<2x32xf32>
    %115 = arith.subf %114, %113 : vector<2x32xf32>
    %116 = arith.mulf %115, %112 : vector<2x32xf32>
    %117 = arith.mulf %113, %66 : vector<2x32xf32>
    %118 = arith.addf %116, %117 : vector<2x32xf32>
    %cst_24 = arith.constant dense<0.000000e+00> : vector<2x256xf32>
    %119 = tpu.matmul %118, %1, %cst_24 {dimension_numbers = #tpu.dot_dimension_numbers<[1], [0], [0], [1], [0, 0, 1, 1], [], []>} : vector<2x32xf32>, vector<32x256xf32>, vector<2x256xf32> -> vector<2x256xf32>
    %120 = vector.extract_strided_slice %119 {offsets = [0, 0], sizes = [2, 96], strides = [1, 1]} : vector<2x256xf32> to vector<2x96xf32>
    %121 = arith.addf %120, %21 : vector<2x96xf32>
    %122 = vector.extract_strided_slice %121 {offsets = [0, 0], sizes = [2, 64], strides = [1, 1]} : vector<2x96xf32> to vector<2x64xf32>
    %123 = vector.extract_strided_slice %93 {offsets = [0, 0], sizes = [2, 64], strides = [1, 1]} : vector<2x96xf32> to vector<2x64xf32>
    %124 = arith.addf %122, %123 : vector<2x64xf32>
    %125 = arith.negf %124 : vector<2x64xf32>
    %126 = math.exp %125 : vector<2x64xf32>
    %cst_25 = arith.constant 1.000000e+00 : f32
    %127 = vector.broadcast %cst_25 : f32 to vector<2x64xf32>
    %128 = arith.addf %127, %126 : vector<2x64xf32>
    %129 = arith.divf %127, %128 : vector<2x64xf32>
    %130 = vector.extract_strided_slice %121 {offsets = [0, 64], sizes = [2, 32], strides = [1, 1]} : vector<2x96xf32> to vector<2x32xf32>
    %131 = vector.extract_strided_slice %129 {offsets = [0, 0], sizes = [2, 32], strides = [1, 1]} : vector<2x64xf32> to vector<2x32xf32>
    %132 = vector.extract_strided_slice %93 {offsets = [0, 64], sizes = [2, 32], strides = [1, 1]} : vector<2x96xf32> to vector<2x32xf32>
    %133 = arith.addf %132, %25 : vector<2x32xf32>
    %134 = arith.mulf %131, %133 : vector<2x32xf32>
    %135 = arith.addf %130, %134 : vector<2x32xf32>
    %136 = math.tanh %135 : vector<2x32xf32>
    %137 = vector.extract_strided_slice %129 {offsets = [0, 32], sizes = [2, 32], strides = [1, 1]} : vector<2x64xf32> to vector<2x32xf32>
    %cst_26 = arith.constant 1.000000e+00 : f32
    %138 = vector.broadcast %cst_26 : f32 to vector<2x32xf32>
    %139 = arith.subf %138, %137 : vector<2x32xf32>
    %140 = arith.mulf %139, %136 : vector<2x32xf32>
    %141 = arith.mulf %137, %90 : vector<2x32xf32>
    %142 = arith.addf %140, %141 : vector<2x32xf32>
    %cst_27 = arith.constant dense<0.000000e+00> : vector<2x128xf32>
    %143 = tpu.matmul %142, %2, %cst_27 {dimension_numbers = #tpu.dot_dimension_numbers<[1], [0], [0], [1], [0, 0, 1, 1], [], []>} : vector<2x32xf32>, vector<32x128xf32>, vector<2x128xf32> -> vector<2x128xf32>
    %144 = vector.extract_strided_slice %119 {offsets = [0, 96], sizes = [2, 96], strides = [1, 1]} : vector<2x256xf32> to vector<2x96xf32>
    %145 = vector.extract_strided_slice %143 {offsets = [0, 16], sizes = [2, 96], strides = [1, 1]} : vector<2x128xf32> to vector<2x96xf32>
    %146 = vector.extract_strided_slice %143 {offsets = [0, 0], sizes = [2, 16], strides = [1, 1]} : vector<2x128xf32> to vector<2x16xf32>
    %147 = arith.addf %146, %27 : vector<2x16xf32>
    %148 = math.tanh %147 : vector<2x16xf32>
    %c2 = arith.constant 2 : index
    %c0_28 = arith.constant 0 : index
    %149 = vector.load %arg8[%c2, %c0_28] : memref<8x16xf32, #tpu.memory_space<vmem>>, vector<2x16xf32>
    tpu.vector_store %arg8[%c2, %c0_28], %148 {strides = array<i32>} : memref<8x16xf32, #tpu.memory_space<vmem>>, vector<2x16xf32>,
    %150 = vector.extract_strided_slice %37 {offsets = [0, 0], sizes = [2, 64], strides = [1, 1]} : vector<2x96xf32> to vector<2x64xf32>
    %151 = vector.extract_strided_slice %144 {offsets = [0, 0], sizes = [2, 64], strides = [1, 1]} : vector<2x96xf32> to vector<2x64xf32>
    %152 = arith.addf %150, %151 : vector<2x64xf32>
    %153 = arith.negf %152 : vector<2x64xf32>
    %154 = math.exp %153 : vector<2x64xf32>
    %cst_29 = arith.constant 1.000000e+00 : f32
    %155 = vector.broadcast %cst_29 : f32 to vector<2x64xf32>
    %156 = arith.addf %155, %154 : vector<2x64xf32>
    %157 = arith.divf %155, %156 : vector<2x64xf32>
    %158 = vector.extract_strided_slice %37 {offsets = [0, 64], sizes = [2, 32], strides = [1, 1]} : vector<2x96xf32> to vector<2x32xf32>
    %159 = vector.extract_strided_slice %157 {offsets = [0, 0], sizes = [2, 32], strides = [1, 1]} : vector<2x64xf32> to vector<2x32xf32>
    %160 = vector.extract_strided_slice %144 {offsets = [0, 64], sizes = [2, 32], strides = [1, 1]} : vector<2x96xf32> to vector<2x32xf32>
    %161 = arith.addf %160, %23 : vector<2x32xf32>
    %162 = arith.mulf %159, %161 : vector<2x32xf32>
    %163 = arith.addf %158, %162 : vector<2x32xf32>
    %164 = math.tanh %163 : vector<2x32xf32>
    %165 = vector.extract_strided_slice %157 {offsets = [0, 32], sizes = [2, 32], strides = [1, 1]} : vector<2x64xf32> to vector<2x32xf32>
    %cst_30 = arith.constant 1.000000e+00 : f32
    %166 = vector.broadcast %cst_30 : f32 to vector<2x32xf32>
    %167 = arith.subf %166, %165 : vector<2x32xf32>
    %168 = arith.mulf %167, %164 : vector<2x32xf32>
    %169 = arith.mulf %165, %118 : vector<2x32xf32>
    %170 = arith.addf %168, %169 : vector<2x32xf32>
    %cst_31 = arith.constant dense<0.000000e+00> : vector<2x256xf32>
    %171 = tpu.matmul %170, %1, %cst_31 {dimension_numbers = #tpu.dot_dimension_numbers<[1], [0], [0], [1], [0, 0, 1, 1], [], []>} : vector<2x32xf32>, vector<32x256xf32>, vector<2x256xf32> -> vector<2x256xf32>
    %172 = vector.extract_strided_slice %171 {offsets = [0, 0], sizes = [2, 96], strides = [1, 1]} : vector<2x256xf32> to vector<2x96xf32>
    %173 = arith.addf %172, %21 : vector<2x96xf32>
    %174 = vector.extract_strided_slice %173 {offsets = [0, 0], sizes = [2, 64], strides = [1, 1]} : vector<2x96xf32> to vector<2x64xf32>
    %175 = vector.extract_strided_slice %145 {offsets = [0, 0], sizes = [2, 64], strides = [1, 1]} : vector<2x96xf32> to vector<2x64xf32>
    %176 = arith.addf %174, %175 : vector<2x64xf32>
    %177 = arith.negf %176 : vector<2x64xf32>
    %178 = math.exp %177 : vector<2x64xf32>
    %cst_32 = arith.constant 1.000000e+00 : f32
    %179 = vector.broadcast %cst_32 : f32 to vector<2x64xf32>
    %180 = arith.addf %179, %178 : vector<2x64xf32>
    %181 = arith.divf %179, %180 : vector<2x64xf32>
    %182 = vector.extract_strided_slice %173 {offsets = [0, 64], sizes = [2, 32], strides = [1, 1]} : vector<2x96xf32> to vector<2x32xf32>
    %183 = vector.extract_strided_slice %181 {offsets = [0, 0], sizes = [2, 32], strides = [1, 1]} : vector<2x64xf32> to vector<2x32xf32>
    %184 = vector.extract_strided_slice %145 {offsets = [0, 64], sizes = [2, 32], strides = [1, 1]} : vector<2x96xf32> to vector<2x32xf32>
    %185 = arith.addf %184, %25 : vector<2x32xf32>
    %186 = arith.mulf %183, %185 : vector<2x32xf32>
    %187 = arith.addf %182, %186 : vector<2x32xf32>
    %188 = math.tanh %187 : vector<2x32xf32>
    %189 = vector.extract_strided_slice %181 {offsets = [0, 32], sizes = [2, 32], strides = [1, 1]} : vector<2x64xf32> to vector<2x32xf32>
    %cst_33 = arith.constant 1.000000e+00 : f32
    %190 = vector.broadcast %cst_33 : f32 to vector<2x32xf32>
    %191 = arith.subf %190, %189 : vector<2x32xf32>
    %192 = arith.mulf %191, %188 : vector<2x32xf32>
    %193 = arith.mulf %189, %142 : vector<2x32xf32>
    %194 = arith.addf %192, %193 : vector<2x32xf32>
    %cst_34 = arith.constant dense<0.000000e+00> : vector<2x128xf32>
    %195 = tpu.matmul %194, %2, %cst_34 {dimension_numbers = #tpu.dot_dimension_numbers<[1], [0], [0], [1], [0, 0, 1, 1], [], []>} : vector<2x32xf32>, vector<32x128xf32>, vector<2x128xf32> -> vector<2x128xf32>
    %196 = vector.extract_strided_slice %171 {offsets = [0, 96], sizes = [2, 96], strides = [1, 1]} : vector<2x256xf32> to vector<2x96xf32>
    %197 = vector.extract_strided_slice %195 {offsets = [0, 16], sizes = [2, 96], strides = [1, 1]} : vector<2x128xf32> to vector<2x96xf32>
    %198 = vector.extract_strided_slice %195 {offsets = [0, 0], sizes = [2, 16], strides = [1, 1]} : vector<2x128xf32> to vector<2x16xf32>
    %199 = arith.addf %198, %27 : vector<2x16xf32>
    %200 = math.tanh %199 : vector<2x16xf32>
    %c4 = arith.constant 4 : index
    %c0_35 = arith.constant 0 : index
    %201 = vector.load %arg8[%c4, %c0_35] : memref<8x16xf32, #tpu.memory_space<vmem>>, vector<2x16xf32>
    tpu.vector_store %arg8[%c4, %c0_35], %200 {strides = array<i32>} : memref<8x16xf32, #tpu.memory_space<vmem>>, vector<2x16xf32>,
    %202 = vector.extract_strided_slice %37 {offsets = [0, 0], sizes = [2, 64], strides = [1, 1]} : vector<2x96xf32> to vector<2x64xf32>
    %203 = vector.extract_strided_slice %196 {offsets = [0, 0], sizes = [2, 64], strides = [1, 1]} : vector<2x96xf32> to vector<2x64xf32>
    %204 = arith.addf %202, %203 : vector<2x64xf32>
    %205 = arith.negf %204 : vector<2x64xf32>
    %206 = math.exp %205 : vector<2x64xf32>
    %cst_36 = arith.constant 1.000000e+00 : f32
    %207 = vector.broadcast %cst_36 : f32 to vector<2x64xf32>
    %208 = arith.addf %207, %206 : vector<2x64xf32>
    %209 = arith.divf %207, %208 : vector<2x64xf32>
    %210 = vector.extract_strided_slice %37 {offsets = [0, 64], sizes = [2, 32], strides = [1, 1]} : vector<2x96xf32> to vector<2x32xf32>
    %211 = vector.extract_strided_slice %209 {offsets = [0, 0], sizes = [2, 32], strides = [1, 1]} : vector<2x64xf32> to vector<2x32xf32>
    %212 = vector.extract_strided_slice %196 {offsets = [0, 64], sizes = [2, 32], strides = [1, 1]} : vector<2x96xf32> to vector<2x32xf32>
    %213 = arith.addf %212, %23 : vector<2x32xf32>
    %214 = arith.mulf %211, %213 : vector<2x32xf32>
    %215 = arith.addf %210, %214 : vector<2x32xf32>
    %216 = math.tanh %215 : vector<2x32xf32>
    %217 = vector.extract_strided_slice %209 {offsets = [0, 32], sizes = [2, 32], strides = [1, 1]} : vector<2x64xf32> to vector<2x32xf32>
    %cst_37 = arith.constant 1.000000e+00 : f32
    %218 = vector.broadcast %cst_37 : f32 to vector<2x32xf32>
    %219 = arith.subf %218, %217 : vector<2x32xf32>
    %220 = arith.mulf %219, %216 : vector<2x32xf32>
    %221 = arith.mulf %217, %170 : vector<2x32xf32>
    %222 = arith.addf %220, %221 : vector<2x32xf32>
    %cst_38 = arith.constant dense<0.000000e+00> : vector<2x256xf32>
    %223 = tpu.matmul %222, %1, %cst_38 {dimension_numbers = #tpu.dot_dimension_numbers<[1], [0], [0], [1], [0, 0, 1, 1], [], []>} : vector<2x32xf32>, vector<32x256xf32>, vector<2x256xf32> -> vector<2x256xf32>
    %224 = vector.extract_strided_slice %223 {offsets = [0, 0], sizes = [2, 96], strides = [1, 1]} : vector<2x256xf32> to vector<2x96xf32>
    %225 = arith.addf %224, %21 : vector<2x96xf32>
    %226 = vector.extract_strided_slice %225 {offsets = [0, 0], sizes = [2, 64], strides = [1, 1]} : vector<2x96xf32> to vector<2x64xf32>
    %227 = vector.extract_strided_slice %197 {offsets = [0, 0], sizes = [2, 64], strides = [1, 1]} : vector<2x96xf32> to vector<2x64xf32>
    %228 = arith.addf %226, %227 : vector<2x64xf32>
    %229 = arith.negf %228 : vector<2x64xf32>
    %230 = math.exp %229 : vector<2x64xf32>
    %cst_39 = arith.constant 1.000000e+00 : f32
    %231 = vector.broadcast %cst_39 : f32 to vector<2x64xf32>
    %232 = arith.addf %231, %230 : vector<2x64xf32>
    %233 = arith.divf %231, %232 : vector<2x64xf32>
    %234 = vector.extract_strided_slice %225 {offsets = [0, 64], sizes = [2, 32], strides = [1, 1]} : vector<2x96xf32> to vector<2x32xf32>
    %235 = vector.extract_strided_slice %233 {offsets = [0, 0], sizes = [2, 32], strides = [1, 1]} : vector<2x64xf32> to vector<2x32xf32>
    %236 = vector.extract_strided_slice %197 {offsets = [0, 64], sizes = [2, 32], strides = [1, 1]} : vector<2x96xf32> to vector<2x32xf32>
    %237 = arith.addf %236, %25 : vector<2x32xf32>
    %238 = arith.mulf %235, %237 : vector<2x32xf32>
    %239 = arith.addf %234, %238 : vector<2x32xf32>
    %240 = math.tanh %239 : vector<2x32xf32>
    %241 = vector.extract_strided_slice %233 {offsets = [0, 32], sizes = [2, 32], strides = [1, 1]} : vector<2x64xf32> to vector<2x32xf32>
    %cst_40 = arith.constant 1.000000e+00 : f32
    %242 = vector.broadcast %cst_40 : f32 to vector<2x32xf32>
    %243 = arith.subf %242, %241 : vector<2x32xf32>
    %244 = arith.mulf %243, %240 : vector<2x32xf32>
    %245 = arith.mulf %241, %194 : vector<2x32xf32>
    %246 = arith.addf %244, %245 : vector<2x32xf32>
    %cst_41 = arith.constant dense<0.000000e+00> : vector<2x128xf32>
    %247 = tpu.matmul %246, %2, %cst_41 {dimension_numbers = #tpu.dot_dimension_numbers<[1], [0], [0], [1], [0, 0, 1, 1], [], []>} : vector<2x32xf32>, vector<32x128xf32>, vector<2x128xf32> -> vector<2x128xf32>
    %248 = vector.extract_strided_slice %247 {offsets = [0, 0], sizes = [2, 16], strides = [1, 1]} : vector<2x128xf32> to vector<2x16xf32>
    %249 = arith.addf %248, %27 : vector<2x16xf32>
    %250 = math.tanh %249 : vector<2x16xf32>
    %c6 = arith.constant 6 : index
    %c0_42 = arith.constant 0 : index
    %251 = vector.load %arg8[%c6, %c0_42] : memref<8x16xf32, #tpu.memory_space<vmem>>, vector<2x16xf32>
    tpu.vector_store %arg8[%c6, %c0_42], %250 {strides = array<i32>} : memref<8x16xf32, #tpu.memory_space<vmem>>, vector<2x16xf32>,
    %c0_43 = arith.constant 0 : index
    %c0_44 = arith.constant 0 : index
    %252 = vector.load %arg8[%c0_43, %c0_44] : memref<8x16xf32, #tpu.memory_space<vmem>>, vector<8x16xf32>
    %cst_45 = arith.constant dense<0.000000e+00> : vector<8x96xf32>
    %253 = tpu.matmul %252, %7, %cst_45 {dimension_numbers = #tpu.dot_dimension_numbers<[1], [0], [0], [1], [0, 0, 1, 1], [], []>} : vector<8x16xf32>, vector<16x96xf32>, vector<8x96xf32> -> vector<8x96xf32>
    %254 = vector.broadcast %14 : vector<1x96xf32> to vector<8x96xf32>
    %255 = arith.addf %253, %254 : vector<8x96xf32>
    %c0_46 = arith.constant 0 : index
    %c0_47 = arith.constant 0 : index
    %c0_48 = arith.constant 0 : index
    %256 = vector.load %arg0[%c0_46, %c0_47, %c0_48] : memref<4x8x16xf32, #tpu.memory_space<vmem>>, vector<1x8x16xf32>
    %257 = vector.shape_cast %256 : vector<1x8x16xf32> to vector<8x16xf32>
    %cst_49 = arith.constant dense<0.000000e+00> : vector<8x96xf32>
    %258 = tpu.matmul %257, %8, %cst_49 {dimension_numbers = #tpu.dot_dimension_numbers<[1], [0], [0], [1], [0, 0, 1, 1], [], []>} : vector<8x16xf32>, vector<16x96xf32>, vector<8x96xf32> -> vector<8x96xf32>
    %259 = arith.addf %258, %255 : vector<8x96xf32>
    %c0_50 = arith.constant 0 : index
    %c0_51 = arith.constant 0 : index
    %c0_52 = arith.constant 0 : index
    %260 = vector.load %arg9[%c0_50, %c0_51, %c0_52] : memref<4x8x96xf32, #tpu.memory_space<vmem>>, vector<1x8x96xf32>
    %261 = vector.shape_cast %260 : vector<1x8x96xf32> to vector<8x96xf32>
    %262 = vector.shape_cast %259 : vector<8x96xf32> to vector<1x8x96xf32>
    tpu.vector_store %arg9[%c0_50, %c0_51, %c0_52], %262 {strides = array<i32>} : memref<4x8x96xf32, #tpu.memory_space<vmem>>, vector<1x8x96xf32>,
    %c1_53 = arith.constant 1 : index
    %c0_54 = arith.constant 0 : index
    %c0_55 = arith.constant 0 : index
    %263 = vector.load %arg0[%c1_53, %c0_54, %c0_55] : memref<4x8x16xf32, #tpu.memory_space<vmem>>, vector<1x8x16xf32>
    %264 = vector.shape_cast %263 : vector<1x8x16xf32> to vector<8x16xf32>
    %cst_56 = arith.constant dense<0.000000e+00> : vector<8x96xf32>
    %265 = tpu.matmul %264, %8, %cst_56 {dimension_numbers = #tpu.dot_dimension_numbers<[1], [0], [0], [1], [0, 0, 1, 1], [], []>} : vector<8x16xf32>, vector<16x96xf32>, vector<8x96xf32> -> vector<8x96xf32>
    %266 = arith.addf %265, %255 : vector<8x96xf32>
    %c1_57 = arith.constant 1 : index
    %c0_58 = arith.constant 0 : index
    %c0_59 = arith.constant 0 : index
    %267 = vector.load %arg9[%c1_57, %c0_58, %c0_59] : memref<4x8x96xf32, #tpu.memory_space<vmem>>, vector<1x8x96xf32>
    %268 = vector.shape_cast %267 : vector<1x8x96xf32> to vector<8x96xf32>
    %269 = vector.shape_cast %266 : vector<8x96xf32> to vector<1x8x96xf32>
    tpu.vector_store %arg9[%c1_57, %c0_58, %c0_59], %269 {strides = array<i32>} : memref<4x8x96xf32, #tpu.memory_space<vmem>>, vector<1x8x96xf32>,
    %c2_60 = arith.constant 2 : index
    %c0_61 = arith.constant 0 : index
    %c0_62 = arith.constant 0 : index
    %270 = vector.load %arg0[%c2_60, %c0_61, %c0_62] : memref<4x8x16xf32, #tpu.memory_space<vmem>>, vector<1x8x16xf32>
    %271 = vector.shape_cast %270 : vector<1x8x16xf32> to vector<8x16xf32>
    %cst_63 = arith.constant dense<0.000000e+00> : vector<8x96xf32>
    %272 = tpu.matmul %271, %8, %cst_63 {dimension_numbers = #tpu.dot_dimension_numbers<[1], [0], [0], [1], [0, 0, 1, 1], [], []>} : vector<8x16xf32>, vector<16x96xf32>, vector<8x96xf32> -> vector<8x96xf32>
    %273 = arith.addf %272, %255 : vector<8x96xf32>
    %c2_64 = arith.constant 2 : index
    %c0_65 = arith.constant 0 : index
    %c0_66 = arith.constant 0 : index
    %274 = vector.load %arg9[%c2_64, %c0_65, %c0_66] : memref<4x8x96xf32, #tpu.memory_space<vmem>>, vector<1x8x96xf32>
    %275 = vector.shape_cast %274 : vector<1x8x96xf32> to vector<8x96xf32>
    %276 = vector.shape_cast %273 : vector<8x96xf32> to vector<1x8x96xf32>
    tpu.vector_store %arg9[%c2_64, %c0_65, %c0_66], %276 {strides = array<i32>} : memref<4x8x96xf32, #tpu.memory_space<vmem>>, vector<1x8x96xf32>,
    %c3 = arith.constant 3 : index
    %c0_67 = arith.constant 0 : index
    %c0_68 = arith.constant 0 : index
    %277 = vector.load %arg0[%c3, %c0_67, %c0_68] : memref<4x8x16xf32, #tpu.memory_space<vmem>>, vector<1x8x16xf32>
    %278 = vector.shape_cast %277 : vector<1x8x16xf32> to vector<8x16xf32>
    %cst_69 = arith.constant dense<0.000000e+00> : vector<8x96xf32>
    %279 = tpu.matmul %278, %8, %cst_69 {dimension_numbers = #tpu.dot_dimension_numbers<[1], [0], [0], [1], [0, 0, 1, 1], [], []>} : vector<8x16xf32>, vector<16x96xf32>, vector<8x96xf32> -> vector<8x96xf32>
    %280 = arith.addf %279, %255 : vector<8x96xf32>
    %c3_70 = arith.constant 3 : index
    %c0_71 = arith.constant 0 : index
    %c0_72 = arith.constant 0 : index
    %281 = vector.load %arg9[%c3_70, %c0_71, %c0_72] : memref<4x8x96xf32, #tpu.memory_space<vmem>>, vector<1x8x96xf32>
    %282 = vector.shape_cast %281 : vector<1x8x96xf32> to vector<8x96xf32>
    %283 = vector.shape_cast %280 : vector<8x96xf32> to vector<1x8x96xf32>
    tpu.vector_store %arg9[%c3_70, %c0_71, %c0_72], %283 {strides = array<i32>} : memref<4x8x96xf32, #tpu.memory_space<vmem>>, vector<1x8x96xf32>,
    %c0_73 = arith.constant 0 : index
    %c0_74 = arith.constant 0 : index
    %c0_75 = arith.constant 0 : index
    %284 = vector.load %arg3[%c0_73, %c0_74, %c0_75] : memref<2x8x32xf32, #tpu.memory_space<vmem>>, vector<1x8x32xf32>
    %285 = vector.shape_cast %284 : vector<1x8x32xf32> to vector<8x32xf32>
    %c1_76 = arith.constant 1 : index
    %c0_77 = arith.constant 0 : index
    %c0_78 = arith.constant 0 : index
    %286 = vector.load %arg3[%c1_76, %c0_77, %c0_78] : memref<2x8x32xf32, #tpu.memory_space<vmem>>, vector<1x8x32xf32>
    %287 = vector.shape_cast %286 : vector<1x8x32xf32> to vector<8x32xf32>
    %cst_79 = arith.constant dense<0.000000e+00> : vector<8x256xf32>
    %288 = tpu.matmul %285, %3, %cst_79 {dimension_numbers = #tpu.dot_dimension_numbers<[1], [0], [0], [1], [0, 0, 1, 1], [], []>} : vector<8x32xf32>, vector<32x256xf32>, vector<8x256xf32> -> vector<8x256xf32>
    %289 = vector.extract_strided_slice %288 {offsets = [0, 96], sizes = [8, 96], strides = [1, 1]} : vector<8x256xf32> to vector<8x96xf32>
    %cst_80 = arith.constant dense<0.000000e+00> : vector<8x128xf32>
    %290 = tpu.matmul %287, %4, %cst_80 {dimension_numbers = #tpu.dot_dimension_numbers<[1], [0], [0], [1], [0, 0, 1, 1], [], []>} : vector<8x32xf32>, vector<32x128xf32>, vector<8x128xf32> -> vector<8x128xf32>
    %291 = vector.extract_strided_slice %290 {offsets = [0, 0], sizes = [8, 96], strides = [1, 1]} : vector<8x128xf32> to vector<8x96xf32>
    %c0_i32 = arith.constant 0 : i32
    %292 = arith.index_cast %c0_i32 : i32 to index
    %c0_81 = arith.constant 0 : index
    %c0_82 = arith.constant 0 : index
    %293 = vector.load %arg9[%292, %c0_81, %c0_82] : memref<4x8x96xf32, #tpu.memory_space<vmem>>, vector<1x8x96xf32>
    %294 = vector.shape_cast %293 : vector<1x8x96xf32> to vector<8x96xf32>
    %295 = vector.extract_strided_slice %294 {offsets = [0, 0], sizes = [8, 64], strides = [1, 1]} : vector<8x96xf32> to vector<8x64xf32>
    %296 = vector.extract_strided_slice %289 {offsets = [0, 0], sizes = [8, 64], strides = [1, 1]} : vector<8x96xf32> to vector<8x64xf32>
    %297 = arith.addf %295, %296 : vector<8x64xf32>
    %298 = arith.negf %297 : vector<8x64xf32>
    %299 = math.exp %298 : vector<8x64xf32>
    %cst_83 = arith.constant 1.000000e+00 : f32
    %300 = vector.broadcast %cst_83 : f32 to vector<8x64xf32>
    %301 = arith.addf %300, %299 : vector<8x64xf32>
    %302 = arith.divf %300, %301 : vector<8x64xf32>
    %303 = vector.extract_strided_slice %294 {offsets = [0, 64], sizes = [8, 32], strides = [1, 1]} : vector<8x96xf32> to vector<8x32xf32>
    %304 = vector.extract_strided_slice %302 {offsets = [0, 0], sizes = [8, 32], strides = [1, 1]} : vector<8x64xf32> to vector<8x32xf32>
    %305 = vector.extract_strided_slice %289 {offsets = [0, 64], sizes = [8, 32], strides = [1, 1]} : vector<8x96xf32> to vector<8x32xf32>
    %306 = arith.addf %305, %31 : vector<8x32xf32>
    %307 = arith.mulf %304, %306 : vector<8x32xf32>
    %308 = arith.addf %303, %307 : vector<8x32xf32>
    %309 = math.tanh %308 : vector<8x32xf32>
    %310 = vector.extract_strided_slice %302 {offsets = [0, 32], sizes = [8, 32], strides = [1, 1]} : vector<8x64xf32> to vector<8x32xf32>
    %cst_84 = arith.constant 1.000000e+00 : f32
    %311 = vector.broadcast %cst_84 : f32 to vector<8x32xf32>
    %312 = arith.subf %311, %310 : vector<8x32xf32>
    %313 = arith.mulf %312, %309 : vector<8x32xf32>
    %314 = arith.mulf %310, %285 : vector<8x32xf32>
    %315 = arith.addf %313, %314 : vector<8x32xf32>
    %cst_85 = arith.constant dense<0.000000e+00> : vector<8x256xf32>
    %316 = tpu.matmul %315, %3, %cst_85 {dimension_numbers = #tpu.dot_dimension_numbers<[1], [0], [0], [1], [0, 0, 1, 1], [], []>} : vector<8x32xf32>, vector<32x256xf32>, vector<8x256xf32> -> vector<8x256xf32>
    %317 = vector.extract_strided_slice %316 {offsets = [0, 0], sizes = [8, 96], strides = [1, 1]} : vector<8x256xf32> to vector<8x96xf32>
    %318 = arith.addf %317, %29 : vector<8x96xf32>
    %319 = vector.extract_strided_slice %318 {offsets = [0, 0], sizes = [8, 64], strides = [1, 1]} : vector<8x96xf32> to vector<8x64xf32>
    %320 = vector.extract_strided_slice %291 {offsets = [0, 0], sizes = [8, 64], strides = [1, 1]} : vector<8x96xf32> to vector<8x64xf32>
    %321 = arith.addf %319, %320 : vector<8x64xf32>
    %322 = arith.negf %321 : vector<8x64xf32>
    %323 = math.exp %322 : vector<8x64xf32>
    %cst_86 = arith.constant 1.000000e+00 : f32
    %324 = vector.broadcast %cst_86 : f32 to vector<8x64xf32>
    %325 = arith.addf %324, %323 : vector<8x64xf32>
    %326 = arith.divf %324, %325 : vector<8x64xf32>
    %327 = vector.extract_strided_slice %318 {offsets = [0, 64], sizes = [8, 32], strides = [1, 1]} : vector<8x96xf32> to vector<8x32xf32>
    %328 = vector.extract_strided_slice %326 {offsets = [0, 0], sizes = [8, 32], strides = [1, 1]} : vector<8x64xf32> to vector<8x32xf32>
    %329 = vector.extract_strided_slice %291 {offsets = [0, 64], sizes = [8, 32], strides = [1, 1]} : vector<8x96xf32> to vector<8x32xf32>
    %330 = arith.addf %329, %33 : vector<8x32xf32>
    %331 = arith.mulf %328, %330 : vector<8x32xf32>
    %332 = arith.addf %327, %331 : vector<8x32xf32>
    %333 = math.tanh %332 : vector<8x32xf32>
    %334 = vector.extract_strided_slice %326 {offsets = [0, 32], sizes = [8, 32], strides = [1, 1]} : vector<8x64xf32> to vector<8x32xf32>
    %cst_87 = arith.constant 1.000000e+00 : f32
    %335 = vector.broadcast %cst_87 : f32 to vector<8x32xf32>
    %336 = arith.subf %335, %334 : vector<8x32xf32>
    %337 = arith.mulf %336, %333 : vector<8x32xf32>
    %338 = arith.mulf %334, %287 : vector<8x32xf32>
    %339 = arith.addf %337, %338 : vector<8x32xf32>
    %cst_88 = arith.constant dense<0.000000e+00> : vector<8x128xf32>
    %340 = tpu.matmul %339, %4, %cst_88 {dimension_numbers = #tpu.dot_dimension_numbers<[1], [0], [0], [1], [0, 0, 1, 1], [], []>} : vector<8x32xf32>, vector<32x128xf32>, vector<8x128xf32> -> vector<8x128xf32>
    %341 = arith.index_cast %c0_i32 : i32 to index
    %c0_89 = arith.constant 0 : index
    %c0_90 = arith.constant 0 : index
    %342 = vector.load %arg10[%341, %c0_89, %c0_90] : memref<4x8x128xf32, #tpu.memory_space<vmem>>, vector<1x8x128xf32>
    %343 = vector.shape_cast %342 : vector<1x8x128xf32> to vector<8x128xf32>
    %344 = vector.shape_cast %340 : vector<8x128xf32> to vector<1x8x128xf32>
    tpu.vector_store %arg10[%341, %c0_89, %c0_90], %344 {strides = array<i32>} : memref<4x8x128xf32, #tpu.memory_space<vmem>>, vector<1x8x128xf32>,
    %345 = vector.extract_strided_slice %316 {offsets = [0, 96], sizes = [8, 96], strides = [1, 1]} : vector<8x256xf32> to vector<8x96xf32>
    %346 = vector.extract_strided_slice %340 {offsets = [0, 0], sizes = [8, 96], strides = [1, 1]} : vector<8x128xf32> to vector<8x96xf32>
    %c1_i32 = arith.constant 1 : i32
    %347 = arith.index_cast %c1_i32 : i32 to index
    %c0_91 = arith.constant 0 : index
    %c0_92 = arith.constant 0 : index
    %348 = vector.load %arg9[%347, %c0_91, %c0_92] : memref<4x8x96xf32, #tpu.memory_space<vmem>>, vector<1x8x96xf32>
    %349 = vector.shape_cast %348 : vector<1x8x96xf32> to vector<8x96xf32>
    %350 = vector.extract_strided_slice %349 {offsets = [0, 0], sizes = [8, 64], strides = [1, 1]} : vector<8x96xf32> to vector<8x64xf32>
    %351 = vector.extract_strided_slice %345 {offsets = [0, 0], sizes = [8, 64], strides = [1, 1]} : vector<8x96xf32> to vector<8x64xf32>
    %352 = arith.addf %350, %351 : vector<8x64xf32>
    %353 = arith.negf %352 : vector<8x64xf32>
    %354 = math.exp %353 : vector<8x64xf32>
    %cst_93 = arith.constant 1.000000e+00 : f32
    %355 = vector.broadcast %cst_93 : f32 to vector<8x64xf32>
    %356 = arith.addf %355, %354 : vector<8x64xf32>
    %357 = arith.divf %355, %356 : vector<8x64xf32>
    %358 = vector.extract_strided_slice %349 {offsets = [0, 64], sizes = [8, 32], strides = [1, 1]} : vector<8x96xf32> to vector<8x32xf32>
    %359 = vector.extract_strided_slice %357 {offsets = [0, 0], sizes = [8, 32], strides = [1, 1]} : vector<8x64xf32> to vector<8x32xf32>
    %360 = vector.extract_strided_slice %345 {offsets = [0, 64], sizes = [8, 32], strides = [1, 1]} : vector<8x96xf32> to vector<8x32xf32>
    %361 = arith.addf %360, %31 : vector<8x32xf32>
    %362 = arith.mulf %359, %361 : vector<8x32xf32>
    %363 = arith.addf %358, %362 : vector<8x32xf32>
    %364 = math.tanh %363 : vector<8x32xf32>
    %365 = vector.extract_strided_slice %357 {offsets = [0, 32], sizes = [8, 32], strides = [1, 1]} : vector<8x64xf32> to vector<8x32xf32>
    %cst_94 = arith.constant 1.000000e+00 : f32
    %366 = vector.broadcast %cst_94 : f32 to vector<8x32xf32>
    %367 = arith.subf %366, %365 : vector<8x32xf32>
    %368 = arith.mulf %367, %364 : vector<8x32xf32>
    %369 = arith.mulf %365, %315 : vector<8x32xf32>
    %370 = arith.addf %368, %369 : vector<8x32xf32>
    %cst_95 = arith.constant dense<0.000000e+00> : vector<8x256xf32>
    %371 = tpu.matmul %370, %3, %cst_95 {dimension_numbers = #tpu.dot_dimension_numbers<[1], [0], [0], [1], [0, 0, 1, 1], [], []>} : vector<8x32xf32>, vector<32x256xf32>, vector<8x256xf32> -> vector<8x256xf32>
    %372 = vector.extract_strided_slice %371 {offsets = [0, 0], sizes = [8, 96], strides = [1, 1]} : vector<8x256xf32> to vector<8x96xf32>
    %373 = arith.addf %372, %29 : vector<8x96xf32>
    %374 = vector.extract_strided_slice %373 {offsets = [0, 0], sizes = [8, 64], strides = [1, 1]} : vector<8x96xf32> to vector<8x64xf32>
    %375 = vector.extract_strided_slice %346 {offsets = [0, 0], sizes = [8, 64], strides = [1, 1]} : vector<8x96xf32> to vector<8x64xf32>
    %376 = arith.addf %374, %375 : vector<8x64xf32>
    %377 = arith.negf %376 : vector<8x64xf32>
    %378 = math.exp %377 : vector<8x64xf32>
    %cst_96 = arith.constant 1.000000e+00 : f32
    %379 = vector.broadcast %cst_96 : f32 to vector<8x64xf32>
    %380 = arith.addf %379, %378 : vector<8x64xf32>
    %381 = arith.divf %379, %380 : vector<8x64xf32>
    %382 = vector.extract_strided_slice %373 {offsets = [0, 64], sizes = [8, 32], strides = [1, 1]} : vector<8x96xf32> to vector<8x32xf32>
    %383 = vector.extract_strided_slice %381 {offsets = [0, 0], sizes = [8, 32], strides = [1, 1]} : vector<8x64xf32> to vector<8x32xf32>
    %384 = vector.extract_strided_slice %346 {offsets = [0, 64], sizes = [8, 32], strides = [1, 1]} : vector<8x96xf32> to vector<8x32xf32>
    %385 = arith.addf %384, %33 : vector<8x32xf32>
    %386 = arith.mulf %383, %385 : vector<8x32xf32>
    %387 = arith.addf %382, %386 : vector<8x32xf32>
    %388 = math.tanh %387 : vector<8x32xf32>
    %389 = vector.extract_strided_slice %381 {offsets = [0, 32], sizes = [8, 32], strides = [1, 1]} : vector<8x64xf32> to vector<8x32xf32>
    %cst_97 = arith.constant 1.000000e+00 : f32
    %390 = vector.broadcast %cst_97 : f32 to vector<8x32xf32>
    %391 = arith.subf %390, %389 : vector<8x32xf32>
    %392 = arith.mulf %391, %388 : vector<8x32xf32>
    %393 = arith.mulf %389, %339 : vector<8x32xf32>
    %394 = arith.addf %392, %393 : vector<8x32xf32>
    %cst_98 = arith.constant dense<0.000000e+00> : vector<8x128xf32>
    %395 = tpu.matmul %394, %4, %cst_98 {dimension_numbers = #tpu.dot_dimension_numbers<[1], [0], [0], [1], [0, 0, 1, 1], [], []>} : vector<8x32xf32>, vector<32x128xf32>, vector<8x128xf32> -> vector<8x128xf32>
    %396 = arith.index_cast %c1_i32 : i32 to index
    %c0_99 = arith.constant 0 : index
    %c0_100 = arith.constant 0 : index
    %397 = vector.load %arg10[%396, %c0_99, %c0_100] : memref<4x8x128xf32, #tpu.memory_space<vmem>>, vector<1x8x128xf32>
    %398 = vector.shape_cast %397 : vector<1x8x128xf32> to vector<8x128xf32>
    %399 = vector.shape_cast %395 : vector<8x128xf32> to vector<1x8x128xf32>
    tpu.vector_store %arg10[%396, %c0_99, %c0_100], %399 {strides = array<i32>} : memref<4x8x128xf32, #tpu.memory_space<vmem>>, vector<1x8x128xf32>,
    %400 = vector.extract_strided_slice %371 {offsets = [0, 96], sizes = [8, 96], strides = [1, 1]} : vector<8x256xf32> to vector<8x96xf32>
    %401 = vector.extract_strided_slice %395 {offsets = [0, 0], sizes = [8, 96], strides = [1, 1]} : vector<8x128xf32> to vector<8x96xf32>
    %c2_i32 = arith.constant 2 : i32
    %402 = arith.index_cast %c2_i32 : i32 to index
    %c0_101 = arith.constant 0 : index
    %c0_102 = arith.constant 0 : index
    %403 = vector.load %arg9[%402, %c0_101, %c0_102] : memref<4x8x96xf32, #tpu.memory_space<vmem>>, vector<1x8x96xf32>
    %404 = vector.shape_cast %403 : vector<1x8x96xf32> to vector<8x96xf32>
    %405 = vector.extract_strided_slice %404 {offsets = [0, 0], sizes = [8, 64], strides = [1, 1]} : vector<8x96xf32> to vector<8x64xf32>
    %406 = vector.extract_strided_slice %400 {offsets = [0, 0], sizes = [8, 64], strides = [1, 1]} : vector<8x96xf32> to vector<8x64xf32>
    %407 = arith.addf %405, %406 : vector<8x64xf32>
    %408 = arith.negf %407 : vector<8x64xf32>
    %409 = math.exp %408 : vector<8x64xf32>
    %cst_103 = arith.constant 1.000000e+00 : f32
    %410 = vector.broadcast %cst_103 : f32 to vector<8x64xf32>
    %411 = arith.addf %410, %409 : vector<8x64xf32>
    %412 = arith.divf %410, %411 : vector<8x64xf32>
    %413 = vector.extract_strided_slice %404 {offsets = [0, 64], sizes = [8, 32], strides = [1, 1]} : vector<8x96xf32> to vector<8x32xf32>
    %414 = vector.extract_strided_slice %412 {offsets = [0, 0], sizes = [8, 32], strides = [1, 1]} : vector<8x64xf32> to vector<8x32xf32>
    %415 = vector.extract_strided_slice %400 {offsets = [0, 64], sizes = [8, 32], strides = [1, 1]} : vector<8x96xf32> to vector<8x32xf32>
    %416 = arith.addf %415, %31 : vector<8x32xf32>
    %417 = arith.mulf %414, %416 : vector<8x32xf32>
    %418 = arith.addf %413, %417 : vector<8x32xf32>
    %419 = math.tanh %418 : vector<8x32xf32>
    %420 = vector.extract_strided_slice %412 {offsets = [0, 32], sizes = [8, 32], strides = [1, 1]} : vector<8x64xf32> to vector<8x32xf32>
    %cst_104 = arith.constant 1.000000e+00 : f32
    %421 = vector.broadcast %cst_104 : f32 to vector<8x32xf32>
    %422 = arith.subf %421, %420 : vector<8x32xf32>
    %423 = arith.mulf %422, %419 : vector<8x32xf32>
    %424 = arith.mulf %420, %370 : vector<8x32xf32>
    %425 = arith.addf %423, %424 : vector<8x32xf32>
    %cst_105 = arith.constant dense<0.000000e+00> : vector<8x256xf32>
    %426 = tpu.matmul %425, %3, %cst_105 {dimension_numbers = #tpu.dot_dimension_numbers<[1], [0], [0], [1], [0, 0, 1, 1], [], []>} : vector<8x32xf32>, vector<32x256xf32>, vector<8x256xf32> -> vector<8x256xf32>
    %427 = vector.extract_strided_slice %426 {offsets = [0, 0], sizes = [8, 96], strides = [1, 1]} : vector<8x256xf32> to vector<8x96xf32>
    %428 = arith.addf %427, %29 : vector<8x96xf32>
    %429 = vector.extract_strided_slice %428 {offsets = [0, 0], sizes = [8, 64], strides = [1, 1]} : vector<8x96xf32> to vector<8x64xf32>
    %430 = vector.extract_strided_slice %401 {offsets = [0, 0], sizes = [8, 64], strides = [1, 1]} : vector<8x96xf32> to vector<8x64xf32>
    %431 = arith.addf %429, %430 : vector<8x64xf32>
    %432 = arith.negf %431 : vector<8x64xf32>
    %433 = math.exp %432 : vector<8x64xf32>
    %cst_106 = arith.constant 1.000000e+00 : f32
    %434 = vector.broadcast %cst_106 : f32 to vector<8x64xf32>
    %435 = arith.addf %434, %433 : vector<8x64xf32>
    %436 = arith.divf %434, %435 : vector<8x64xf32>
    %437 = vector.extract_strided_slice %428 {offsets = [0, 64], sizes = [8, 32], strides = [1, 1]} : vector<8x96xf32> to vector<8x32xf32>
    %438 = vector.extract_strided_slice %436 {offsets = [0, 0], sizes = [8, 32], strides = [1, 1]} : vector<8x64xf32> to vector<8x32xf32>
    %439 = vector.extract_strided_slice %401 {offsets = [0, 64], sizes = [8, 32], strides = [1, 1]} : vector<8x96xf32> to vector<8x32xf32>
    %440 = arith.addf %439, %33 : vector<8x32xf32>
    %441 = arith.mulf %438, %440 : vector<8x32xf32>
    %442 = arith.addf %437, %441 : vector<8x32xf32>
    %443 = math.tanh %442 : vector<8x32xf32>
    %444 = vector.extract_strided_slice %436 {offsets = [0, 32], sizes = [8, 32], strides = [1, 1]} : vector<8x64xf32> to vector<8x32xf32>
    %cst_107 = arith.constant 1.000000e+00 : f32
    %445 = vector.broadcast %cst_107 : f32 to vector<8x32xf32>
    %446 = arith.subf %445, %444 : vector<8x32xf32>
    %447 = arith.mulf %446, %443 : vector<8x32xf32>
    %448 = arith.mulf %444, %394 : vector<8x32xf32>
    %449 = arith.addf %447, %448 : vector<8x32xf32>
    %cst_108 = arith.constant dense<0.000000e+00> : vector<8x128xf32>
    %450 = tpu.matmul %449, %4, %cst_108 {dimension_numbers = #tpu.dot_dimension_numbers<[1], [0], [0], [1], [0, 0, 1, 1], [], []>} : vector<8x32xf32>, vector<32x128xf32>, vector<8x128xf32> -> vector<8x128xf32>
    %451 = arith.index_cast %c2_i32 : i32 to index
    %c0_109 = arith.constant 0 : index
    %c0_110 = arith.constant 0 : index
    %452 = vector.load %arg10[%451, %c0_109, %c0_110] : memref<4x8x128xf32, #tpu.memory_space<vmem>>, vector<1x8x128xf32>
    %453 = vector.shape_cast %452 : vector<1x8x128xf32> to vector<8x128xf32>
    %454 = vector.shape_cast %450 : vector<8x128xf32> to vector<1x8x128xf32>
    tpu.vector_store %arg10[%451, %c0_109, %c0_110], %454 {strides = array<i32>} : memref<4x8x128xf32, #tpu.memory_space<vmem>>, vector<1x8x128xf32>,
    %455 = vector.extract_strided_slice %426 {offsets = [0, 96], sizes = [8, 96], strides = [1, 1]} : vector<8x256xf32> to vector<8x96xf32>
    %456 = vector.extract_strided_slice %450 {offsets = [0, 0], sizes = [8, 96], strides = [1, 1]} : vector<8x128xf32> to vector<8x96xf32>
    %c3_i32 = arith.constant 3 : i32
    %457 = arith.index_cast %c3_i32 : i32 to index
    %c0_111 = arith.constant 0 : index
    %c0_112 = arith.constant 0 : index
    %458 = vector.load %arg9[%457, %c0_111, %c0_112] : memref<4x8x96xf32, #tpu.memory_space<vmem>>, vector<1x8x96xf32>
    %459 = vector.shape_cast %458 : vector<1x8x96xf32> to vector<8x96xf32>
    %460 = vector.extract_strided_slice %459 {offsets = [0, 0], sizes = [8, 64], strides = [1, 1]} : vector<8x96xf32> to vector<8x64xf32>
    %461 = vector.extract_strided_slice %455 {offsets = [0, 0], sizes = [8, 64], strides = [1, 1]} : vector<8x96xf32> to vector<8x64xf32>
    %462 = arith.addf %460, %461 : vector<8x64xf32>
    %463 = arith.negf %462 : vector<8x64xf32>
    %464 = math.exp %463 : vector<8x64xf32>
    %cst_113 = arith.constant 1.000000e+00 : f32
    %465 = vector.broadcast %cst_113 : f32 to vector<8x64xf32>
    %466 = arith.addf %465, %464 : vector<8x64xf32>
    %467 = arith.divf %465, %466 : vector<8x64xf32>
    %468 = vector.extract_strided_slice %459 {offsets = [0, 64], sizes = [8, 32], strides = [1, 1]} : vector<8x96xf32> to vector<8x32xf32>
    %469 = vector.extract_strided_slice %467 {offsets = [0, 0], sizes = [8, 32], strides = [1, 1]} : vector<8x64xf32> to vector<8x32xf32>
    %470 = vector.extract_strided_slice %455 {offsets = [0, 64], sizes = [8, 32], strides = [1, 1]} : vector<8x96xf32> to vector<8x32xf32>
    %471 = arith.addf %470, %31 : vector<8x32xf32>
    %472 = arith.mulf %469, %471 : vector<8x32xf32>
    %473 = arith.addf %468, %472 : vector<8x32xf32>
    %474 = math.tanh %473 : vector<8x32xf32>
    %475 = vector.extract_strided_slice %467 {offsets = [0, 32], sizes = [8, 32], strides = [1, 1]} : vector<8x64xf32> to vector<8x32xf32>
    %cst_114 = arith.constant 1.000000e+00 : f32
    %476 = vector.broadcast %cst_114 : f32 to vector<8x32xf32>
    %477 = arith.subf %476, %475 : vector<8x32xf32>
    %478 = arith.mulf %477, %474 : vector<8x32xf32>
    %479 = arith.mulf %475, %425 : vector<8x32xf32>
    %480 = arith.addf %478, %479 : vector<8x32xf32>
    %cst_115 = arith.constant dense<0.000000e+00> : vector<8x256xf32>
    %481 = tpu.matmul %480, %3, %cst_115 {dimension_numbers = #tpu.dot_dimension_numbers<[1], [0], [0], [1], [0, 0, 1, 1], [], []>} : vector<8x32xf32>, vector<32x256xf32>, vector<8x256xf32> -> vector<8x256xf32>
    %482 = vector.extract_strided_slice %481 {offsets = [0, 0], sizes = [8, 96], strides = [1, 1]} : vector<8x256xf32> to vector<8x96xf32>
    %483 = arith.addf %482, %29 : vector<8x96xf32>
    %484 = vector.extract_strided_slice %483 {offsets = [0, 0], sizes = [8, 64], strides = [1, 1]} : vector<8x96xf32> to vector<8x64xf32>
    %485 = vector.extract_strided_slice %456 {offsets = [0, 0], sizes = [8, 64], strides = [1, 1]} : vector<8x96xf32> to vector<8x64xf32>
    %486 = arith.addf %484, %485 : vector<8x64xf32>
    %487 = arith.negf %486 : vector<8x64xf32>
    %488 = math.exp %487 : vector<8x64xf32>
    %cst_116 = arith.constant 1.000000e+00 : f32
    %489 = vector.broadcast %cst_116 : f32 to vector<8x64xf32>
    %490 = arith.addf %489, %488 : vector<8x64xf32>
    %491 = arith.divf %489, %490 : vector<8x64xf32>
    %492 = vector.extract_strided_slice %483 {offsets = [0, 64], sizes = [8, 32], strides = [1, 1]} : vector<8x96xf32> to vector<8x32xf32>
    %493 = vector.extract_strided_slice %491 {offsets = [0, 0], sizes = [8, 32], strides = [1, 1]} : vector<8x64xf32> to vector<8x32xf32>
    %494 = vector.extract_strided_slice %456 {offsets = [0, 64], sizes = [8, 32], strides = [1, 1]} : vector<8x96xf32> to vector<8x32xf32>
    %495 = arith.addf %494, %33 : vector<8x32xf32>
    %496 = arith.mulf %493, %495 : vector<8x32xf32>
    %497 = arith.addf %492, %496 : vector<8x32xf32>
    %498 = math.tanh %497 : vector<8x32xf32>
    %499 = vector.extract_strided_slice %491 {offsets = [0, 32], sizes = [8, 32], strides = [1, 1]} : vector<8x64xf32> to vector<8x32xf32>
    %cst_117 = arith.constant 1.000000e+00 : f32
    %500 = vector.broadcast %cst_117 : f32 to vector<8x32xf32>
    %501 = arith.subf %500, %499 : vector<8x32xf32>
    %502 = arith.mulf %501, %498 : vector<8x32xf32>
    %503 = arith.mulf %499, %449 : vector<8x32xf32>
    %504 = arith.addf %502, %503 : vector<8x32xf32>
    %cst_118 = arith.constant dense<0.000000e+00> : vector<8x128xf32>
    %505 = tpu.matmul %504, %4, %cst_118 {dimension_numbers = #tpu.dot_dimension_numbers<[1], [0], [0], [1], [0, 0, 1, 1], [], []>} : vector<8x32xf32>, vector<32x128xf32>, vector<8x128xf32> -> vector<8x128xf32>
    %506 = arith.index_cast %c3_i32 : i32 to index
    %c0_119 = arith.constant 0 : index
    %c0_120 = arith.constant 0 : index
    %507 = vector.load %arg10[%506, %c0_119, %c0_120] : memref<4x8x128xf32, #tpu.memory_space<vmem>>, vector<1x8x128xf32>
    %508 = vector.shape_cast %507 : vector<1x8x128xf32> to vector<8x128xf32>
    %509 = vector.shape_cast %505 : vector<8x128xf32> to vector<1x8x128xf32>
    tpu.vector_store %arg10[%506, %c0_119, %c0_120], %509 {strides = array<i32>} : memref<4x8x128xf32, #tpu.memory_space<vmem>>, vector<1x8x128xf32>,
    %510 = vector.extract_strided_slice %481 {offsets = [0, 96], sizes = [8, 96], strides = [1, 1]} : vector<8x256xf32> to vector<8x96xf32>
    %511 = vector.extract_strided_slice %505 {offsets = [0, 0], sizes = [8, 96], strides = [1, 1]} : vector<8x128xf32> to vector<8x96xf32>
    %c4_i32 = arith.constant 4 : i32
    %c0_121 = arith.constant 0 : index
    %c0_122 = arith.constant 0 : index
    %c0_123 = arith.constant 0 : index
    %512 = vector.load %arg10[%c0_121, %c0_122, %c0_123] : memref<4x8x128xf32, #tpu.memory_space<vmem>>, vector<4x8x128xf32>
    %513 = vector.extract_strided_slice %512 {offsets = [0, 0, 96], sizes = [4, 8, 8], strides = [1, 1, 1]} : vector<4x8x128xf32> to vector<4x8x8xf32>
    %514 = vector.shape_cast %19 : vector<1x8xf32> to vector<1x1x8xf32>
    %515 = vector.broadcast %514 : vector<1x1x8xf32> to vector<4x8x8xf32>
    %516 = arith.addf %513, %515 : vector<4x8x8xf32>
    %cst_124 = arith.constant dense<0xFF800000> : vector<4x8xf32>
    %517 = vector.multi_reduction <maximumf>, %516, %cst_124 [2] : vector<4x8x8xf32> to vector<4x8xf32>
    %518 = vector.shape_cast %517 : vector<4x8xf32> to vector<4x8x1xf32>
    %519 = vector.broadcast %518 : vector<4x8x1xf32> to vector<4x8x8xf32>
    %520 = arith.subf %516, %519 : vector<4x8x8xf32>
    %521 = math.exp %520 : vector<4x8x8xf32>
    %cst_125 = arith.constant dense<0.000000e+00> : vector<4x8xf32>
    %522 = vector.multi_reduction <add>, %521, %cst_125 [2] : vector<4x8x8xf32> to vector<4x8xf32>
    %523 = vector.shape_cast %522 : vector<4x8xf32> to vector<4x8x1xf32>
    %524 = vector.broadcast %523 : vector<4x8x1xf32> to vector<4x8x8xf32>
    %525 = arith.divf %521, %524 : vector<4x8x8xf32>
    %c0_126 = arith.constant 0 : index
    %c0_127 = arith.constant 0 : index
    %c0_128 = arith.constant 0 : index
    %526 = vector.load %arg7[%c0_126, %c0_127, %c0_128] : memref<4x8x8xf32, #tpu.memory_space<vmem>>, vector<4x8x8xf32>
    tpu.vector_store %arg7[%c0_126, %c0_127, %c0_128], %525 {strides = array<i32>} : memref<4x8x8xf32, #tpu.memory_space<vmem>>, vector<4x8x8xf32>,
    return
  }
}

</mosaic_0001>

<bundles_post_ra>
// kernel: tpu_custom_call.1
= control target key start
LH: loop header
LB: loop body
LE: loop exit
PB: predicated region body
PF: predicated region fallthrough
CT: control target
= control target key end

     0   :  { %12 = vsyncpa [#allocation6], 0  ;;  %s4042_s0 = inlined_call_operand.hbm [shape: f32[4,8,16], index: 0, kind: input, shape index: {}]   ;;  %s4043_s1 = inlined_call_operand.vmem [shape: f32[2,16], index: 1, kind: input, shape index: {}]   ;;  %s4044_s2 = inlined_call_operand.vmem [shape: f32[2,2,32], index: 2, kind: input, shape index: {}]   ;;  %s4045_s3 = inlined_call_operand.hbm [shape: f32[2,8,32], index: 3, kind: input, shape index: {}]   ;;  %s4046_s4 = inlined_call_operand.hbm [shape: f32[32,768], index: 4, kind: input, shape index: {}]   ;;  %s4047_s5 = inlined_call_operand.hbm [shape: f32[16,384], index: 5, kind: input, shape index: {}]   ;;  %s4048_s6 = inlined_call_operand.vmem [shape: f32[8,128], index: 6, kind: input, shape index: {}]   ;;  %s4049_s7 = inlined_call_operand.hbm [shape: f32[4,8,8], index: 7, kind: output, shape index: {}]  }
   0x1   :  { %13 = vsyncpa [#allocation9], 0 }
   0x2   :  { %14 = vsyncpa [#allocation12], 0 }
   0x3   :  { %15 = vsyncpa [#allocation7], 0  ;;  %s3459_s24 = smov [#allocation8]   ;;  %s3460_s26 = smov [#allocation5]  }
   0x4   :  { %s37_s25 = sshll.u32 %s3459_s24, 4  ;;  %s21_s27 = sshll.u32 %s3460_s26, 4  ;;  %s38_s25 = int_to_ptr.vmem [resolvable:$true] %s37_s25  ;;  %s3518_s27 = int_to_ptr.vmem [resolvable:$true] %s21_s27 }
   0x5   :  { %s3341_s30 = scalar_lea.hbm %s4045_s3, 256 }
   0x6   :  { %p3342_p0 = scmp.ne.s32.totalorder %s4045_s3, %s3341_s30  ;;  %p3345_p1 = scmp.lt.u32.totalorder %s3341_s30, %s4045_s3 }
   0x8   :  { %p3347_p2 = pnand %p3345_p1, %p3342_p0 }
   0xa   :  { %3350 = shalt.err (!%p3347_p2)
}
   0xb   :  { %s3351_s12 = scalar_lea.vmem %s38_s25, 256  ;;  %p3356_p4 = scmp.lt.s32.totalorder %s38_s25, %s38_s25 }
   0xc   :  { %p3352_p3 = scmp.ne.s32.totalorder %s38_s25, %s3351_s12  ;;  %p3357_p5 = scmp.lt.s32.totalorder %s3351_s12, %s3351_s12 }
   0xe   :  { %p3358_p6 = por %p3357_p5, %p3356_p4 }
  0x10   :  { %p3359_p7 = pnand %p3358_p6, %p3352_p3 }
  0x12   :  { %3362 = shalt.err (!%p3359_p7)
}
  0x13   :  { %s3461_s13 = smov 128   ;;  %s3462_s14 = smov 8  }
  0x14   :  { %43 = dma.hbm_to_vmem [thread:$0]  %s4045_s3, 256, %s38_s25, [#allocation9], %s3461_s13, %s3461_s13, %s3462_s14  }
  0x15   :  { %s3363_s19 = scalar_lea.hbm %s4042_s0, 512 }
  0x16   :  { %p3364_p8 = scmp.ne.s32.totalorder %s4042_s0, %s3363_s19  ;;  %p3367_p9 = scmp.lt.u32.totalorder %s3363_s19, %s4042_s0 }
  0x18   :  { %p3369_p10 = pnand %p3367_p9, %p3364_p8 }
  0x1a   :  { %3372 = shalt.err (!%p3369_p10)
}
  0x1b   :  { %s3373_s24 = scalar_lea.vmem %s3518_s27, 512  ;;  %p3378_p12 = scmp.lt.s32.totalorder %s3518_s27, %s3518_s27 }
  0x1c   :  { %p3374_p11 = scmp.ne.s32.totalorder %s3518_s27, %s3373_s24  ;;  %p3379_p13 = scmp.lt.s32.totalorder %s3373_s24, %s3373_s24 }
  0x1e   :  { %p3380_p0 = por %p3379_p13, %p3378_p12 }
  0x20   :  { %p3381_p1 = pnand %p3380_p0, %p3374_p11 }
  0x22   :  { %3384 = shalt.err (!%p3381_p1)
}
  0x23   :  { %27 = dma.hbm_to_vmem [thread:$0]  %s4042_s0, 512, %s3518_s27, [#allocation6], %s3461_s13, %s3461_s13, %s3462_s14  }
  0x24   :  { %s3463_s26 = smov [#allocation10]   ;;  %s3385_s8 = scalar_lea.hbm %s4046_s4, 3072 }
  0x25   :  { %s49_s28 = sshll.u32 %s3463_s26, 4  ;;  %p3386_p2 = scmp.ne.s32.totalorder %s4046_s4, %s3385_s8  ;;  %s50_s28 = int_to_ptr.vmem [resolvable:$true] %s49_s28 }
  0x26   :  { %p3389_p3 = scmp.lt.u32.totalorder %s3385_s8, %s4046_s4 }
  0x28   :  { %p3391_p4 = pnand %p3389_p3, %p3386_p2 }
  0x2a   :  { %3394 = shalt.err (!%p3391_p4)
}
  0x2b   :  { %s3395_s15 = scalar_lea.vmem %s50_s28, 3072  ;;  %p3400_p6 = scmp.lt.s32.totalorder %s50_s28, %s50_s28 }
  0x2c   :  { %p3396_p5 = scmp.ne.s32.totalorder %s50_s28, %s3395_s15  ;;  %p3401_p7 = scmp.lt.s32.totalorder %s3395_s15, %s3395_s15 }
  0x2e   :  { %p3402_p8 = por %p3401_p7, %p3400_p6 }
  0x30   :  { %p3403_p9 = pnand %p3402_p8, %p3396_p5 }
  0x32   :  { %3406 = shalt.err (!%p3403_p9)
}
  0x33   :  { %s3464_s0 = smov 768   ;;  %s3465_s27 = smov 48  }
  0x34   :  { %55 = dma.hbm_to_vmem [thread:$0]  %s4046_s4, 3072, %s50_s28, [#allocation9], %s3464_s0, %s3464_s0, %s3465_s27  }
  0x35   :  { %s3466_s18 = smov [#allocation11]   ;;  %s3407_s22 = scalar_lea.hbm %s4047_s5, 768 }
  0x36   :  { %s61_s19 = sshll.u32 %s3466_s18, 4  ;;  %p3408_p10 = scmp.ne.s32.totalorder %s4047_s5, %s3407_s22  ;;  %s62_s19 = int_to_ptr.vmem [resolvable:$true] %s61_s19 }
  0x37   :  { %p3411_p11 = scmp.lt.u32.totalorder %s3407_s22, %s4047_s5 }
  0x39   :  { %p3413_p12 = pnand %p3411_p11, %p3408_p10 }
  0x3b   :  { %3416 = shalt.err (!%p3413_p12)
}
  0x3c   :  { %s3417_s26 = scalar_lea.vmem %s62_s19, 768  ;;  %p3422_p0 = scmp.lt.s32.totalorder %s62_s19, %s62_s19 }
  0x3d   :  { %p3418_p13 = scmp.ne.s32.totalorder %s62_s19, %s3417_s26  ;;  %p3423_p1 = scmp.lt.s32.totalorder %s3417_s26, %s3417_s26 }
  0x3f   :  { %p3424_p2 = por %p3423_p1, %p3422_p0 }
  0x41   :  { %p3425_p3 = pnand %p3424_p2, %p3418_p13 }
  0x43   :  { %3428 = shalt.err (!%p3425_p3)
}
  0x44   :  { %s3467_s4 = smov 384   ;;  %s3468_s28 = smov 24  }
  0x45   :  { %67 = dma.hbm_to_vmem [thread:$0]  %s4047_s5, 768, %s62_s19, [#allocation12], %s3467_s4, %s3467_s4, %s3468_s28  }
  0x46   :  { %3451 = dma.done.wait [#allocation6], 512  }
  0x47   :  { %3452 = vsyncadd [#allocation6], 4294966784 }
  0x48   :  { %3453 = dma.done.wait [#allocation9], 3328  }
  0x49   :  { %3454 = vsyncadd [#allocation9], 4294963968 }
  0x4a   :  { %3455 = dma.done.wait [#allocation12], 768  }
  0x4b   :  { %3456 = vsyncadd [#allocation12], 4294966528  ;;  %v113_v0 = vlaneseq  ;;  %v3469_v1 = vmov 0.0   ;;  %v3470_v2 = vmov 0.0|0.0   ;;  %vm3471_vm0 = vmmov 0   ;;  %v83_v4 = vld [vmem:[#allocation10 + $0x8] sm:$0xff] }
  0x4c   :  { %279 = vmatprep.mubr.f32.mxu1 %v3469_v1  ;;  %3044 = vmatprep.subr.bf16.mxu0 %v3470_v2  ;;  %v89_v5 = vld [vmem:[#allocation10 + $0x38] sm:$0xff]  ;;  %v82_v6 = vld [vmem:[#allocation10] sm:$0xff]  ;;  %v88_v9 = vld [vmem:[#allocation10 + $0x30] sm:$0xff]  ;;  %s3472_s9 = smov 64   ;;  %vm134_vm1 = vcmask 130048   ;;  %vm211_vm2 = vcmask 261120  }
  0x4d   :  { %2896 = vmatprep.mubr.msk.f32.mxu0 %vm3471_vm0, %v3469_v1  ;;  %v3584_v3 = vshrl.u32 %v113_v0, 7  ;;  %v3587_v8 = vpack.c.bf16 %v89_v5, %v83_v4  ;;  %v95_v10 = vld [vmem:[#allocation10 + $0x68] sm:$0xff]  ;;  %v101_v11 = vld [vmem:[#allocation10 + $0x98] sm:$0xff]  ;;  %v3589_v12 = vpack.c.bf16 %v88_v9, %v82_v6  ;;  %v94_v14 = vld [vmem:[#allocation10 + $0x60] sm:$0xff]  ;;  %s3474_s15 = smov 96   ;;  %s3475_s17 = smov 112  }
  0x4e   :  { %v3591_v13 = vpack.c.bf16 %v101_v11, %v95_v10  ;;  %v100_v15 = vld [vmem:[#allocation10 + $0x90] sm:$0xff]  ;;  %v3597_v16 = vld [vmem:[%s4048_s6] sm:$0xff]  ;;  %v106_v17 = vld [vmem:[#allocation11] sm:$0xff]  ;;  %vm593_vm3 = vcmask 123904   ;;  %vm1405_vm4 = vcmask 785408   ;;  %vm2680_vm5 = vcmask 851712  }
  0x4f   :  { %v119_v7 = vsub.s32 0, %v3584_v3  ;;  %3048 = vmatprep.subr.bf16.mxu1 %v3587_v8  ;;  %v109_v18 = vld [vmem:[#allocation11 + $0x18] sm:$0xff]  ;;  %v3600_v19 = vpack.c.bf16 %v100_v15, %v94_v14  ;;  %v133_v22 = vld [vmem:[%s4043_s1] sm:$0x3]  ;;  %s3473_s1 = smov 32   ;;  %v84_v41 = vld [vmem:[#allocation10 + $0x10] sm:$0xff] }
  0x50   :  { %3050 = vmatpush1.bf16.msra.mxu1 %v3589_v12  ;;  %v3045_v21 = vpack.c.bf16 %v109_v18, %v106_v17  ;;  %v208_v23 = vld [vmem:[%s4044_s2] sm:$0x3]  ;;  %v90_v42 = vld [vmem:[#allocation10 + $0x40] sm:$0xff]  ;;  %v96_v46 = vld [vmem:[#allocation10 + $0x70] sm:$0xff]  ;;  %v115_v50 = vsub.s32 1, %v3584_v3  ;;  %vm2721_vm6 = vcmask 64512  }
  0x51   :  { %v120_v20 = vrot.slane %v3597_v16, %v119_v7  ;;  %3052 = vmatprep.subr.bf16.mxu1 %v3591_v13  ;;  %v3634_v43 = vpack.c.bf16 %v90_v42, %v84_v41  ;;  %v102_v47 = vld [vmem:[#allocation10 + $0xa0] sm:$0xff]  ;;  %v3646_v49 = vld [vmem:[%s4044_s2 + $0x2] sm:$0x3]  ;;  %s3476_s2 = smov 80  }
  0x52   :  { %3046 = vmatpush3.bf16.msra.mxu0 %v3045_v21  ;;  %v3640_v48 = vpack.c.bf16 %v102_v47, %v96_v46  ;;  %v3653_v51 = vrot.slane %v3597_v16, %v115_v50 }
  0x53   :  { %375 = vrot.lane.b32.xlu0 %v120_v20, %s3472_s9  ;;  %3055 = vmatprep.subr.bf16.mxu0 %v3470_v2 }
  0x54   :  { %3054 = vmatpush1.bf16.msra.mxu1 %v3600_v19 }
  0x55   :  { %2897 = vmatmul.mubr.msk.f32.vlgmr.msra.gmra.mrb[0].mxu0 %vm134_vm1, %v133_v22  ;;  %3062 = vmatprep.subr.bf16.mxu1 %v3587_v8 }
  0x56   :  { %2907 = vmatprep.mubr.msk.f32.mxu0 %vm3471_vm0, %v3469_v1  ;;  %3057 = vmatpush3.bf16.msra.mxu0 %v3634_v43 }
  0x57   :  { %2783 = vmatmul.mubr.msk.f32.vlgmr.msra.gmra.mrb[0].mxu1 %vm211_vm2, %v208_v23  ;;  %3058 = vmatprep.subr.bf16.mxu0 %v3470_v2 }
  0x58   :  { %3064 = vmatpush1.bf16.msra.mxu1 %v3589_v12  ;;  %470 = vmatprep.mubr.f32.mxu1 %v3469_v1 }
  0x59   :  { %3066 = vmatprep.subr.bf16.mxu1 %v3591_v13 }
  0x5a   :  { %3060 = vmatpush3.bf16.msra.mxu0 %v3640_v48 }
  0x5b   :  { %3069 = vmatprep.subr.bf16.mxu0 %v3470_v2 }
  0x5c   :  { %3068 = vmatpush1.bf16.msra.mxu1 %v3600_v19 }
  0x5d   :  { %3076 = vmatprep.subr.bf16.mxu1 %v3587_v8  ;;  %2908 = vmatmul.mubr.msk.f32.vlgmr.msra.gmra.mrb[2].mxu0 %vm211_vm2, %v3646_v49 }
  0x5e   :  { %3071 = vmatpush3.bf16.msra.mxu0 %v3634_v43  ;;  %2918 = vmatprep.mubr.msk.f32.mxu0 %vm3471_vm0, %v3469_v1 }
  0x5f   :  { %3072 = vmatprep.subr.bf16.mxu0 %v3470_v2 }
  0x62   :  { %3074 = vmatpush3.bf16.msra.mxu0 %v3640_v48 }
  0x63   :  { %3083 = vmatprep.subr.bf16.mxu0 %v3470_v2 }
  0xc5   :  { %v3623_v27 = vpop.permute.xlu0 %375 }
 0x128   :  { %v204_v24 = vpop.f32.mrb[0].mxu0 }
 0x129   :  { %v2898_v25 = vpop.f32.mrb[1].mxu0  ;;  %v3629_v30 = vadd.f32 %v204_v24, %v120_v20 }
 0x12a   :  { %v281_v26 = vpop.f32.mrb[0].mxu1 }
 0x12b   :  { %361 = vrot.lane.b32.xlu0 %v281_v26, %s3473_s1  ;;  %v283_v28 = vpop.f32.mrb[1].mxu1 }
 0x12c   :  { %363 = vrot.lane.b32.xlu1 %v283_v28, %s3473_s1  ;;  %v378_v29 = vadd.f32 %v3623_v27, %v283_v28 }
 0x130   :  { %380 = vrot.lane.b32.xlu1 %v378_v29, %s3474_s15  ;;  %v355_v60 = vpop.f32.mrb[2].mxu0 }
 0x131   :  { %v2909_v61 = vpop.f32.mrb[3].mxu0 }
 0x19d   :  { %v362_v31 = vpop.permute.xlu0 %361 }
 0x19e   :  { %v364_v32 = vpop.permute.xlu1 %363 }
 0x19f   :  { %v365_v33 = vsel %vm211_vm2, %v362_v31, %v364_v32 }
 0x1a0   :  { %v367_v34 = vadd.f32 %v365_v33, %v3629_v30 }
 0x1a2   :  { %v2785_v35 = vmul.f32 -1.442695, %v367_v34  ;;  %v381_v39 = vpop.permute.xlu1 %380 }
 0x1a4   :  { %3221 = vpow2.f32 %v2785_v35 }
 0x1ae   :  { %v3222_v36 = vpop.eup %3221 }
 0x1af   :  { %v371_v37 = vadd.f32 1.0, %v3222_v36 }
 0x1b1   :  { %3223 = vrcp.f32 %v371_v37 }
 0x1bb   :  { %v3224_v38 = vpop.eup %3223 }
 0x1bc   :  { %v383_v40 = vmul.f32 %v3224_v38, %v381_v39  ;;  %v390_v54 = vsub.f32 1.0, %v3224_v38 }
 0x1be   :  { %385 = vrot.lane.b32.xlu0 %v383_v40, %s3472_s9 }
 0x1c2   :  { %396 = vrot.lane.b32.xlu0 %v208_v23, %s3473_s1 }
 0x1c6   :  { %490 = vrot.lane.b32.xlu0 %v3653_v51, %s3475_s17 }
 0x230   :  { %v386_v44 = vpop.permute.xlu0 %385 }
 0x231   :  { %v388_v45 = vadd.f32 %v386_v44, %v3629_v30 }
 0x233   :  { %3225 = vtanh.f32 %v388_v45 }
 0x234   :  { %v397_v53 = vpop.permute.xlu0 %396 }
 0x235   :  { %v399_v56 = vmul.f32 %v3224_v38, %v397_v53 }
 0x238   :  { %v3668_v59 = vpop.permute.xlu0 %490 }
 0x239   :  { %v493_v62 = vadd.f32 %v3668_v59, %v355_v60 }
 0x23b   :  { %495 = vrot.lane.b32.xlu0 %v493_v62, %s3465_s27 }
 0x23d   :  { %v3226_v52 = vpop.eup %3225 }
 0x23e   :  { %392 = vrot.lane.b32.xlu1 %v3226_v52, %s3474_s15 }
 0x2ad   :  { %v496_v17 = vpop.permute.xlu0 %495 }
 0x2b0   :  { %v393_v55 = vpop.permute.xlu1 %392 }
 0x2b1   :  { %v395_v57 = vmul.f32 %v393_v55, %v390_v54  ;;  %v123_v54 = vsub.s32 4, %v3584_v3 }
 0x2b3   :  { %v3664_v58 = vadd.f32 %v399_v56, %v395_v57  ;;  %v3717_v55 = vrot.slane %v3597_v16, %v123_v54 }
 0x2b5   :  { %402 = vrot.lane.b32.xlu1 %v3664_v58, %s3474_s15 }
 0x2b9   :  { %479 = vrot.lane.b32.xlu1 %v355_v60, %s3475_s17 }
 0x327   :  { %v403_v63 = vpop.permute.xlu1 %402 }
 0x328   :  { %2786 = vmatmul.mubr.msk.f32.vlgmr.msra.gmra.mrb[2].mxu1 %vm211_vm2, %v403_v63 }
 0x329   :  { %3078 = vmatpush1.bf16.msra.mxu1 %v3589_v12  ;;  %699 = vmatprep.mubr.f32.mxu1 %v3469_v1 }
 0x32a   :  { %3080 = vmatprep.subr.bf16.mxu1 %v3591_v13 }
 0x32b   :  { %v480_v4 = vpop.permute.xlu1 %479 }
 0x32d   :  { %3082 = vmatpush1.bf16.msra.mxu1 %v3600_v19 }
 0x32e   :  { %3090 = vmatprep.subr.bf16.mxu1 %v3587_v8 }
 0x3fb   :  { %v472_v0 = vpop.f32.mrb[2].mxu1 }
 0x3fc   :  { %v477_v5 = vadd.f32 %v472_v0, %v3653_v51  ;;  %597 = vrot.lane.b32.xlu1 %v472_v0, %s3473_s1  ;;  %v474_v6 = vpop.f32.mrb[3].mxu1 }
 0x3fd   :  { %v610_v7 = vadd.f32 %v474_v6, %v3623_v27  ;;  %599 = vrot.lane.b32.xlu0 %v474_v6, %s3473_s1 }
 0x3fe   :  { %v482_v9 = vadd.f32 %v480_v4, %v477_v5 }
 0x400   :  { %v2787_v10 = vmul.f32 -1.442695, %v482_v9  ;;  %612 = vrot.lane.b32.xlu1 %v610_v7, %s3474_s15 }
 0x402   :  { %3227 = vpow2.f32 %v2787_v10 }
 0x40c   :  { %v3228_v11 = vpop.eup %3227 }
 0x40d   :  { %v486_v14 = vadd.f32 1.0, %v3228_v11 }
 0x40f   :  { %3229 = vrcp.f32 %v486_v14 }
 0x419   :  { %v3230_v15 = vpop.eup %3229 }
 0x41a   :  { %v498_v18 = vmul.f32 %v3230_v15, %v496_v17  ;;  %v505_v38 = vsub.f32 1.0, %v3230_v15 }
 0x41c   :  { %500 = vrot.lane.b32.xlu0 %v498_v18, %s3472_s9 }
 0x46e   :  { %v598_v20 = vpop.permute.xlu1 %597 }
 0x46f   :  { %v600_v21 = vpop.permute.xlu0 %599 }
 0x470   :  { %v601_v22 = vsel %vm211_vm2, %v598_v20, %v600_v21 }
 0x471   :  { %v603_v23 = vadd.f32 %v601_v22, %v3629_v30 }
 0x472   :  { %v613_v29 = vpop.permute.xlu1 %612 }
 0x473   :  { %v2789_v24 = vmul.f32 -1.442695, %v603_v23 }
 0x475   :  { %3231 = vpow2.f32 %v2789_v24 }
 0x47f   :  { %v3232_v25 = vpop.eup %3231 }
 0x480   :  { %v607_v26 = vadd.f32 1.0, %v3232_v25 }
 0x482   :  { %3233 = vrcp.f32 %v607_v26 }
 0x48c   :  { %v3234_v28 = vpop.eup %3233 }
 0x48d   :  { %v615_v31 = vmul.f32 %v3234_v28, %v613_v29  ;;  %v622_v45 = vsub.f32 1.0, %v3234_v28  ;;  %v628_v47 = vmul.f32 %v3234_v28, %v3664_v58 }
 0x48e   :  { %v501_v32 = vpop.permute.xlu0 %500 }
 0x48f   :  { %v503_v33 = vadd.f32 %v501_v32, %v477_v5  ;;  %617 = vrot.lane.b32.xlu1 %v615_v31, %s3472_s9 }
 0x491   :  { %3235 = vtanh.f32 %v503_v33 }
 0x493   :  { %511 = vrot.lane.b32.xlu1 %v3646_v49, %s3473_s1 }
 0x49b   :  { %v3236_v34 = vpop.eup %3235 }
 0x49c   :  { %507 = vrot.lane.b32.xlu0 %v3236_v34, %s3474_s15 }
 0x501   :  { %v618_v35 = vpop.permute.xlu1 %617 }
 0x502   :  { %v620_v36 = vadd.f32 %v618_v35, %v3629_v30 }
 0x504   :  { %3237 = vtanh.f32 %v620_v36 }
 0x505   :  { %v512_v37 = vpop.permute.xlu1 %511 }
 0x506   :  { %v514_v41 = vmul.f32 %v3230_v15, %v512_v37 }
 0x50e   :  { %v3238_v39 = vpop.eup %3237  ;;  %v508_v40 = vpop.permute.xlu0 %507 }
 0x50f   :  { %v510_v42 = vmul.f32 %v508_v40, %v505_v38  ;;  %624 = vrot.lane.b32.xlu0 %v3238_v39, %s3474_s15 }
 0x511   :  { %v3693_v44 = vadd.f32 %v514_v41, %v510_v42 }
 0x513   :  { %517 = vrot.lane.b32.xlu1 %v3693_v44, %s3474_s15 }
 0x581   :  { %v625_v46 = vpop.permute.xlu0 %624 }
 0x582   :  { %v627_v49 = vmul.f32 %v625_v46, %v622_v45 }
 0x584   :  { %v3698_v50 = vadd.f32 %v628_v47, %v627_v49 }
 0x585   :  { %v518_v52 = vpop.permute.xlu1 %517 }
 0x586   :  { %2919 = vmatmul.mubr.msk.f32.vlgmr.msra.gmra.mrb[4].mxu0 %vm211_vm2, %v518_v52  ;;  %631 = vrot.lane.b32.xlu0 %v3698_v50, %s3474_s15 }
 0x587   :  { %3085 = vmatpush3.bf16.msra.mxu0 %v3634_v43  ;;  %2929 = vmatprep.mubr.msk.f32.mxu0 %vm3471_vm0, %v3469_v1 }
 0x588   :  { %3086 = vmatprep.subr.bf16.mxu0 %v3470_v2 }
 0x58b   :  { %3088 = vmatpush3.bf16.msra.mxu0 %v3640_v48 }
 0x58c   :  { %3097 = vmatprep.subr.bf16.mxu0 %v3470_v2 }
 0x5f8   :  { %v632_v53 = vpop.permute.xlu0 %631 }
 0x5f9   :  { %2790 = vmatmul.mubr.msk.f32.vlgmr.msra.gmra.mrb[4].mxu1 %vm211_vm2, %v632_v53 }
 0x5fa   :  { %3092 = vmatpush1.bf16.msra.mxu1 %v3589_v12  ;;  %920 = vmatprep.mubr.f32.mxu1 %v3469_v1 }
 0x5fb   :  { %3094 = vmatprep.subr.bf16.mxu1 %v3591_v13 }
 0x5fe   :  { %3096 = vmatpush1.bf16.msra.mxu1 %v3600_v19 }
 0x5ff   :  { %3104 = vmatprep.subr.bf16.mxu1 %v3587_v8 }
 0x659   :  { %v587_v56 = vpop.f32.mrb[4].mxu0 }
 0x65a   :  { %v591_v57 = vadd.f32 %v587_v56, %v3717_v55  ;;  %708 = vrot.lane.b32.xlu1 %v587_v56, %s3475_s17  ;;  %v2920_v58 = vpop.f32.mrb[5].mxu0  ;;  %v718_v60 = vadd.f32 %v587_v56, %v3668_v59 }
 0x65c   :  { %3239 = vtanh.f32 %v591_v57  ;;  %720 = vrot.lane.b32.xlu0 %v718_v60, %s3465_s27 }
 0x666   :  { %v3240_v61 = vpop.eup %3239 }
 0x667   :  { %594 = vst.msk [vmem:[#allocation2] sm:$0x3] %vm593_vm3, %v3240_v61 }
 0x6cc   :  { %v701_v8 = vpop.f32.mrb[4].mxu1  ;;  %v709_v0 = vpop.permute.xlu1 %708 }
 0x6cd   :  { %v706_v62 = vadd.f32 %v701_v8, %v3653_v51  ;;  %818 = vrot.lane.b32.xlu1 %v701_v8, %s3473_s1  ;;  %v703_v63 = vpop.f32.mrb[5].mxu1 }
 0x6ce   :  { %v831_v4 = vadd.f32 %v703_v63, %v3623_v27  ;;  %820 = vrot.lane.b32.xlu0 %v703_v63, %s3473_s1  ;;  %v721_v11 = vpop.permute.xlu0 %720 }
 0x6cf   :  { %v711_v5 = vadd.f32 %v709_v0, %v706_v62 }
 0x6d1   :  { %v2791_v6 = vmul.f32 -1.442695, %v711_v5  ;;  %833 = vrot.lane.b32.xlu1 %v831_v4, %s3474_s15 }
 0x6d3   :  { %3241 = vpow2.f32 %v2791_v6 }
 0x6dd   :  { %v3242_v7 = vpop.eup %3241 }
 0x6de   :  { %v715_v9 = vadd.f32 1.0, %v3242_v7 }
 0x6e0   :  { %3243 = vrcp.f32 %v715_v9 }
 0x6ea   :  { %v3244_v10 = vpop.eup %3243 }
 0x6eb   :  { %v723_v14 = vmul.f32 %v3244_v10, %v721_v11  ;;  %v730_v34 = vsub.f32 1.0, %v3244_v10  ;;  %v736_v37 = vmul.f32 %v3244_v10, %v3693_v44 }
 0x6ed   :  { %725 = vrot.lane.b32.xlu0 %v723_v14, %s3472_s9 }
 0x73f   :  { %v819_v15 = vpop.permute.xlu1 %818 }
 0x740   :  { %v821_v17 = vpop.permute.xlu0 %820 }
 0x741   :  { %v822_v18 = vsel %vm211_vm2, %v819_v15, %v821_v17 }
 0x742   :  { %v824_v20 = vadd.f32 %v822_v18, %v3629_v30 }
 0x743   :  { %v834_v25 = vpop.permute.xlu1 %833 }
 0x744   :  { %v2793_v21 = vmul.f32 -1.442695, %v824_v20 }
 0x746   :  { %3245 = vpow2.f32 %v2793_v21 }
 0x750   :  { %v3246_v22 = vpop.eup %3245 }
 0x751   :  { %v828_v23 = vadd.f32 1.0, %v3246_v22 }
 0x753   :  { %3247 = vrcp.f32 %v828_v23 }
 0x75d   :  { %v3248_v24 = vpop.eup %3247 }
 0x75e   :  { %v836_v26 = vmul.f32 %v3248_v24, %v834_v25  ;;  %v843_v40 = vsub.f32 1.0, %v3248_v24  ;;  %v849_v42 = vmul.f32 %v3248_v24, %v3698_v50 }
 0x75f   :  { %v726_v28 = vpop.permute.xlu0 %725 }
 0x760   :  { %v728_v29 = vadd.f32 %v726_v28, %v706_v62  ;;  %838 = vrot.lane.b32.xlu1 %v836_v26, %s3472_s9 }
 0x762   :  { %3249 = vtanh.f32 %v728_v29 }
 0x76c   :  { %v3250_v31 = vpop.eup %3249 }
 0x76d   :  { %732 = vrot.lane.b32.xlu0 %v3250_v31, %s3474_s15 }
 0x7d2   :  { %v839_v32 = vpop.permute.xlu1 %838 }
 0x7d3   :  { %v841_v33 = vadd.f32 %v839_v32, %v3629_v30 }
 0x7d5   :  { %3251 = vtanh.f32 %v841_v33 }
 0x7df   :  { %v3252_v35 = vpop.eup %3251  ;;  %v733_v36 = vpop.permute.xlu0 %732 }
 0x7e0   :  { %v735_v38 = vmul.f32 %v733_v36, %v730_v34  ;;  %845 = vrot.lane.b32.xlu1 %v3252_v35, %s3474_s15 }
 0x7e2   :  { %v3737_v39 = vadd.f32 %v736_v37, %v735_v38 }
 0x7e4   :  { %739 = vrot.lane.b32.xlu0 %v3737_v39, %s3474_s15 }
 0x852   :  { %v846_v41 = vpop.permute.xlu1 %845 }
 0x853   :  { %v848_v45 = vmul.f32 %v846_v41, %v843_v40 }
 0x855   :  { %v3742_v46 = vadd.f32 %v849_v42, %v848_v45 }
 0x856   :  { %v740_v47 = vpop.permute.xlu0 %739 }
 0x857   :  { %852 = vrot.lane.b32.xlu1 %v3742_v46, %s3474_s15  ;;  %2930 = vmatmul.mubr.msk.f32.vlgmr.msra.gmra.mrb[6].mxu0 %vm211_vm2, %v740_v47 }
 0x858   :  { %3099 = vmatpush3.bf16.msra.mxu0 %v3634_v43  ;;  %2940 = vmatprep.mubr.msk.f32.mxu0 %vm3471_vm0, %v3469_v1 }
 0x859   :  { %3100 = vmatprep.subr.bf16.mxu0 %v3470_v2 }
 0x85c   :  { %3102 = vmatpush3.bf16.msra.mxu0 %v3640_v48 }
 0x85d   :  { %3111 = vmatprep.subr.bf16.mxu0 %v3470_v2 }
 0x8c9   :  { %v853_v44 = vpop.permute.xlu1 %852 }
 0x8ca   :  { %2794 = vmatmul.mubr.msk.f32.vlgmr.msra.gmra.mrb[6].mxu1 %vm211_vm2, %v853_v44 }
 0x8cb   :  { %3106 = vmatpush1.bf16.msra.mxu1 %v3589_v12  ;;  %1141 = vmatprep.mubr.f32.mxu1 %v3469_v1 }
 0x8cc   :  { %3108 = vmatprep.subr.bf16.mxu1 %v3591_v13 }
 0x8cf   :  { %3110 = vmatpush1.bf16.msra.mxu1 %v3600_v19 }
 0x8d0   :  { %3117 = vmatprep.subr.bf16.mxu1 %v3470_v2 }
 0x92a   :  { %v809_v49 = vpop.f32.mrb[6].mxu0 }
 0x92b   :  { %v813_v50 = vadd.f32 %v809_v49, %v3717_v55  ;;  %929 = vrot.lane.b32.xlu0 %v809_v49, %s3475_s17  ;;  %v2931_v52 = vpop.f32.mrb[7].mxu0  ;;  %v939_v53 = vadd.f32 %v809_v49, %v3668_v59 }
 0x92d   :  { %3253 = vtanh.f32 %v813_v50  ;;  %941 = vrot.lane.b32.xlu1 %v939_v53, %s3465_s27 }
 0x937   :  { %v3254_v12 = vpop.eup %3253 }
 0x938   :  { %815 = vst.msk [vmem:[#allocation2 + $0x2] sm:$0x3] %vm593_vm3, %v3254_v12 }
 0x99d   :  { %v922_v54 = vpop.f32.mrb[6].mxu1  ;;  %v930_v56 = vpop.permute.xlu0 %929 }
 0x99e   :  { %v927_v13 = vadd.f32 %v922_v54, %v3653_v51  ;;  %v924_v19 = vpop.f32.mrb[7].mxu1  ;;  %1039 = vrot.lane.b32.xlu0 %v922_v54, %s3473_s1 }
 0x99f   :  { %v1052_v57 = vadd.f32 %v924_v19, %v3623_v27  ;;  %1041 = vrot.lane.b32.xlu1 %v924_v19, %s3473_s1  ;;  %v942_v63 = vpop.permute.xlu1 %941 }
 0x9a0   :  { %v932_v58 = vadd.f32 %v930_v56, %v927_v13 }
 0x9a2   :  { %v2795_v60 = vmul.f32 -1.442695, %v932_v58  ;;  %1054 = vrot.lane.b32.xlu0 %v1052_v57, %s3474_s15  ;;  %v108_v58 = vld [vmem:[#allocation11 + $0x10] sm:$0xff] }
 0x9a4   :  { %3255 = vpow2.f32 %v2795_v60  ;;  %v111_v60 = vld [vmem:[#allocation11 + $0x28] sm:$0xff] }
 0x9ae   :  { %v3256_v61 = vpop.eup %3255 }
 0x9af   :  { %v936_v8 = vadd.f32 1.0, %v3256_v61  ;;  %v3799_v61 = vpack.c.bf16 %v111_v60, %v108_v58 }
 0x9b1   :  { %3257 = vrcp.f32 %v936_v8 }
 0x9bb   :  { %v3258_v62 = vpop.eup %3257 }
 0x9bc   :  { %v944_v0 = vmul.f32 %v3258_v62, %v942_v63  ;;  %v951_v23 = vsub.f32 1.0, %v3258_v62  ;;  %v957_v26 = vmul.f32 %v3258_v62, %v3737_v39  ;;  %v86_v62 = vld [vmem:[#allocation10 + $0x20] sm:$0xff]  ;;  %v92_v63 = vld [vmem:[#allocation10 + $0x50] sm:$0xff] }
 0x9be   :  { %946 = vrot.lane.b32.xlu1 %v944_v0, %s3472_s9  ;;  %v1331_v0 = vld [vmem:[#allocation5] sm:$0xff] }
 0xa10   :  { %v1040_v4 = vpop.permute.xlu0 %1039 }
 0xa11   :  { %v1042_v5 = vpop.permute.xlu1 %1041 }
 0xa12   :  { %v1043_v6 = vsel %vm211_vm2, %v1040_v4, %v1042_v5  ;;  %v3806_v4 = vpack.c.bf16 %v92_v63, %v86_v62  ;;  %v85_v5 = vld [vmem:[#allocation10 + $0x18] sm:$0xff]  ;;  %v87_v62 = vld [vmem:[#allocation10 + $0x28] sm:$0xff] }
 0xa13   :  { %v1045_v27 = vadd.f32 %v1043_v6, %v3629_v30  ;;  %v91_v6 = vld [vmem:[#allocation10 + $0x48] sm:$0xff]  ;;  %v93_v63 = vld [vmem:[#allocation10 + $0x58] sm:$0xff] }
 0xa14   :  { %v1055_v14 = vpop.permute.xlu0 %1054 }
 0xa15   :  { %v2797_v7 = vmul.f32 -1.442695, %v1045_v27  ;;  %v98_v27 = vld [vmem:[#allocation10 + $0x80] sm:$0xff] }
 0xa17   :  { %3259 = vpow2.f32 %v2797_v7  ;;  %v104_v7 = vld [vmem:[#allocation10 + $0xb0] sm:$0xff] }
 0xa21   :  { %v3260_v9 = vpop.eup %3259 }
 0xa22   :  { %v1049_v10 = vadd.f32 1.0, %v3260_v9  ;;  %v1485_v9 = vld [vmem:[#allocation5 + $0x10] sm:$0xff] }
 0xa24   :  { %3261 = vrcp.f32 %v1049_v10  ;;  %v3812_v10 = vpack.c.bf16 %v91_v6, %v85_v5  ;;  %v3863_v5 = vpack.c.bf16 %v93_v63, %v87_v62  ;;  %v105_v6 = vld [vmem:[#allocation10 + $0xb8] sm:$0xff] }
 0xa2e   :  { %v3262_v11 = vpop.eup %3261 }
 0xa2f   :  { %v1057_v15 = vmul.f32 %v3262_v11, %v1055_v14  ;;  %v1064_v31 = vsub.f32 1.0, %v3262_v11  ;;  %v1070_v33 = vmul.f32 %v3262_v11, %v3742_v46  ;;  %v3815_v11 = vpack.c.bf16 %v104_v7, %v98_v27  ;;  %v97_v14 = vld [vmem:[#allocation10 + $0x78] sm:$0xff] }
 0xa30   :  { %v947_v17 = vpop.permute.xlu1 %946 }
 0xa31   :  { %v949_v18 = vadd.f32 %v947_v17, %v927_v13  ;;  %1059 = vrot.lane.b32.xlu0 %v1057_v15, %s3472_s9  ;;  %v103_v15 = vld [vmem:[#allocation10 + $0xa8] sm:$0xff] }
 0xa32   :  { %v3819_v17 = vpack.c.bf16 %v103_v15, %v97_v14  ;;  %v127_v14 = vsub.s32 3, %v3584_v3 }
 0xa33   :  { %3263 = vtanh.f32 %v949_v18  ;;  %v3824_v18 = vld [vmem:[#allocation8] sm:$0xff] }
 0xa34   :  { %v3878_v15 = vrot.slane %v3597_v16, %v127_v14 }
 0xa3d   :  { %v3264_v20 = vpop.eup %3263 }
 0xa3e   :  { %953 = vrot.lane.b32.xlu1 %v3264_v20, %s3474_s15  ;;  %v131_v20 = vsub.s32 2, %v3584_v3 }
 0xaa3   :  { %v1060_v21 = vpop.permute.xlu0 %1059 }
 0xaa4   :  { %v1062_v22 = vadd.f32 %v1060_v21, %v3629_v30  ;;  %v132_v21 = vrot.slane %v3597_v16, %v131_v20 }
 0xaa6   :  { %3265 = vtanh.f32 %v1062_v22  ;;  %v107_v22 = vld [vmem:[#allocation11 + $0x8] sm:$0xff] }
 0xab0   :  { %v3266_v24 = vpop.eup %3265  ;;  %v954_v25 = vpop.permute.xlu1 %953 }
 0xab1   :  { %v956_v28 = vmul.f32 %v954_v25, %v951_v23  ;;  %1066 = vrot.lane.b32.xlu0 %v3266_v24, %s3474_s15  ;;  %v110_v23 = vld [vmem:[#allocation11 + $0x20] sm:$0xff] }
 0xab2   :  { %v3118_v24 = vpack.c.bf16 %v110_v23, %v107_v22 }
 0xab3   :  { %v958_v29 = vadd.f32 %v957_v26, %v956_v28 }
 0xab5   :  { %960 = vrot.lane.b32.xlu1 %v958_v29, %s3474_s15 }
 0xb23   :  { %v1067_v32 = vpop.permute.xlu0 %1066 }
 0xb24   :  { %v1069_v34 = vmul.f32 %v1067_v32, %v1064_v31 }
 0xb26   :  { %v1071_v35 = vadd.f32 %v1070_v33, %v1069_v34 }
 0xb27   :  { %v961_v36 = vpop.permute.xlu1 %960 }
 0xb28   :  { %1073 = vrot.lane.b32.xlu0 %v1071_v35, %s3474_s15  ;;  %2941 = vmatmul.mubr.msk.f32.vlgmr.msra.gmra.mrb[8].mxu0 %vm211_vm2, %v961_v36 }
 0xb29   :  { %3113 = vmatpush3.bf16.msra.mxu0 %v3634_v43  ;;  %2951 = vmatprep.mubr.msk.f32.mxu0 %vm3471_vm0, %v3469_v1 }
 0xb2a   :  { %3114 = vmatprep.subr.bf16.mxu0 %v3470_v2 }
 0xb2d   :  { %3116 = vmatpush3.bf16.msra.mxu0 %v3640_v48 }
 0xb2e   :  { %3120 = vmatprep.subr.bf16.mxu0 %v3470_v2 }
 0xb9a   :  { %v1074_v30 = vpop.permute.xlu0 %1073 }
 0xb9b   :  { %2798 = vmatmul.mubr.msk.f32.vlgmr.msra.gmra.mrb[8].mxu1 %vm211_vm2, %v1074_v30 }
 0xb9c   :  { %2958 = vmatprep.mubr.msk.f32.mxu1 %vm3471_vm0, %v3469_v1  ;;  %3119 = vmatpush3.bf16.msra.mxu1 %v3118_v24 }
 0xb9d   :  { %3123 = vmatprep.subr.bf16.mxu1 %v3470_v2 }
 0xbfb   :  { %v1030_v37 = vpop.f32.mrb[8].mxu0 }
 0xbfc   :  { %v1034_v38 = vadd.f32 %v1030_v37, %v3717_v55  ;;  %1149 = vrot.lane.b32.xlu1 %v1030_v37, %s3475_s17  ;;  %v2942_v43 = vpop.f32.mrb[9].mxu0  ;;  %v1159_v39 = vadd.f32 %v1030_v37, %v3668_v59 }
 0xbfd   :  { %v1408_v43 = vld [vmem:[#allocation5 + $0x8] sm:$0xff] }
 0xbfe   :  { %3267 = vtanh.f32 %v1034_v38  ;;  %1161 = vrot.lane.b32.xlu0 %v1159_v39, %s3465_s27  ;;  %v1562_v39 = vld [vmem:[#allocation5 + $0x18] sm:$0xff]  ;;  %s3477_s27 = smov [#allocation13]  }
 0xbff   :  { %s2767_s18 = sshll.u32 %s3477_s27, 4  ;;  %s2768_s18 = int_to_ptr.vmem [resolvable:$true] %s2767_s18 }
 0xc00   :  { %s3429_s19 = scalar_lea.vmem %s2768_s18, 512  ;;  %p3434_p5 = scmp.lt.s32.totalorder %s2768_s18, %s2768_s18 }
 0xc01   :  { %p3430_p4 = scmp.ne.s32.totalorder %s2768_s18, %s3429_s19  ;;  %p3435_p6 = scmp.lt.s32.totalorder %s3429_s19, %s3429_s19 }
 0xc03   :  { %p3436_p7 = por %p3435_p6, %p3434_p5 }
 0xc05   :  { %p3437_p8 = pnand %p3436_p7, %p3430_p4 }
 0xc08   :  { %v3268_v48 = vpop.eup %3267 }
 0xc09   :  { %1036 = vst.msk [vmem:[#allocation2 + $0x4] sm:$0x3] %vm593_vm3, %v3268_v48 }
 0xc6e   :  { %v1143_v40 = vpop.f32.mrb[8].mxu1  ;;  %v1150_v45 = vpop.permute.xlu1 %1149 }
 0xc6f   :  { %v1147_v41 = vadd.f32 %v1143_v40, %v3653_v51  ;;  %v1145_v42 = vpop.f32.mrb[9].mxu1 }
 0xc70   :  { %v1162_v52 = vpop.permute.xlu0 %1161 }
 0xc71   :  { %v1152_v46 = vadd.f32 %v1150_v45, %v1147_v41 }
 0xc73   :  { %v2799_v47 = vmul.f32 -1.442695, %v1152_v46 }
 0xc75   :  { %3269 = vpow2.f32 %v2799_v47 }
 0xc7f   :  { %v3270_v44 = vpop.eup %3269 }
 0xc80   :  { %v1156_v49 = vadd.f32 1.0, %v3270_v44 }
 0xc82   :  { %3271 = vrcp.f32 %v1156_v49 }
 0xc8c   :  { %v3272_v50 = vpop.eup %3271 }
 0xc8d   :  { %v1164_v59 = vmul.f32 %v3272_v50, %v1162_v52  ;;  %v1171_v51 = vsub.f32 1.0, %v3272_v50  ;;  %v1177_v19 = vmul.f32 %v3272_v50, %v958_v29 }
 0xc8f   :  { %1166 = vrot.lane.b32.xlu1 %v1164_v59, %s3472_s9 }
 0xd01   :  { %v1167_v53 = vpop.permute.xlu1 %1166 }
 0xd02   :  { %v1169_v12 = vadd.f32 %v1167_v53, %v1147_v41 }
 0xd04   :  { %3273 = vtanh.f32 %v1169_v12 }
 0xd0e   :  { %v3274_v54 = vpop.eup %3273 }
 0xd0f   :  { %1173 = vrot.lane.b32.xlu0 %v3274_v54, %s3474_s15 }
 0xd13   :  { %1805 = vrot.lane.b32.xlu0 %v132_v21, %s3472_s9 }
 0xd81   :  { %v1174_v13 = vpop.permute.xlu0 %1173 }
 0xd82   :  { %v1176_v56 = vmul.f32 %v1174_v13, %v1171_v51 }
 0xd84   :  { %v1178_v57 = vadd.f32 %v1177_v19, %v1176_v56 }
 0xd85   :  { %v3840_v35 = vpop.permute.xlu0 %1805 }
 0xd86   :  { %1180 = vrot.lane.b32.xlu1 %v1178_v57, %s3474_s15 }
 0xdf8   :  { %v1181_v8 = vpop.permute.xlu1 %1180 }
 0xdf9   :  { %2952 = vmatmul.mubr.msk.f32.vlgmr.msra.gmra.mrb[10].mxu0 %vm211_vm2, %v1181_v8 }
 0xdfa   :  { %3122 = vmatpush3.bf16.msra.mxu0 %v3799_v61  ;;  %2965 = vmatprep.mubr.msk.f32.mxu0 %vm3471_vm0, %v3469_v1 }
 0xdfb   :  { %3126 = vmatprep.subr.bf16.mxu0 %v3470_v2 }
 0xdfd   :  { %2966 = vmatmul.mubr.msk.f32.vlgmr.msra.gmra.mrb[12].mxu0 %vm134_vm1, %v1331_v0  ;;  %v99_v0 = vld [vmem:[#allocation10 + $0x88] sm:$0xff] }
 0xdfe   :  { %3128 = vmatpush3.bf16.msra.mxu0 %v3799_v61  ;;  %2979 = vmatprep.mubr.msk.f32.mxu0 %vm3471_vm0, %v3469_v1  ;;  %v3866_v27 = vpack.c.bf16 %v105_v6, %v99_v0 }
 0xdff   :  { %3133 = vmatprep.subr.bf16.mxu0 %v3806_v4 }
 0xe01   :  { %2980 = vmatmul.mubr.msk.f32.vlgmr.msra.gmra.mrb[14].mxu0 %vm134_vm1, %v1485_v9  ;;  %v3872_v9 = vld [vmem:[#allocation8 + $0x8] sm:$0xff] }
 0xe02   :  { %3135 = vmatpush1.bf16.msra.mxu0 %v3812_v10  ;;  %1708 = vmatprep.mubr.f32.mxu0 %v3469_v1 }
 0xe03   :  { %3137 = vmatprep.subr.bf16.mxu0 %v3815_v11 }
 0xe06   :  { %3139 = vmatpush1.bf16.msra.mxu0 %v3819_v17 }
 0xe07   :  { %3147 = vmatprep.subr.bf16.mxu0 %v3806_v4 }
 0xe09   :  { %2806 = vmatmul.mubr.msk.f32.vlgmr.msra.gmra.mrb[16].mxu0 %vm211_vm2, %v3824_v18 }
 0xe0a   :  { %3149 = vmatpush1.bf16.msra.mxu0 %v3812_v10  ;;  %1900 = vmatprep.mubr.f32.mxu0 %v3469_v1 }
 0xe0b   :  { %3151 = vmatprep.subr.bf16.mxu0 %v3815_v11 }
 0xe0e   :  { %3153 = vmatpush1.bf16.msra.mxu0 %v3819_v17 }
 0xe0f   :  { %3161 = vmatprep.subr.bf16.mxu0 %v3806_v4 }
 0xecc   :  { %v1250_v25 = vpop.f32.mrb[10].mxu0 }
 0xecd   :  { %v1254_v26 = vadd.f32 %v1250_v25, %v3717_v55  ;;  %v2953_v28 = vpop.f32.mrb[11].mxu0 }
 0xecf   :  { %3275 = vtanh.f32 %v1254_v26 }
 0xed0   :  { %v1401_v29 = vpop.f32.mrb[12].mxu0 }
 0xed1   :  { %v2967_v31 = vpop.f32.mrb[13].mxu0 }
 0xed4   :  { %v1555_v32 = vpop.f32.mrb[14].mxu0 }
 0xed5   :  { %v2981_v33 = vpop.f32.mrb[15].mxu0 }
 0xed9   :  { %v3276_v34 = vpop.eup %3275 }
 0xeda   :  { %1256 = vst.msk [vmem:[#allocation2 + $0x6] sm:$0x3] %vm593_vm3, %v3276_v34 }
 0xedc   :  { %v1710_v36 = vpop.f32.mrb[16].mxu0 }
 0xedd   :  { %1791 = vrot.lane.b32.xlu1 %v1710_v36, %s3473_s1  ;;  %v1712_v30 = vpop.f32.mrb[17].mxu0 }
 0xede   :  { %v1808_v37 = vadd.f32 %v3840_v35, %v1712_v30  ;;  %1793 = vrot.lane.b32.xlu0 %v1712_v30, %s3473_s1 }
 0xee1   :  { %v1257_v38 = vld [vmem:[#allocation2] sm:$0xff]  ;;  %1810 = vrot.lane.b32.xlu1 %v1808_v37, %s3474_s15 }
 0xee2   :  { %2959 = vmatmul.mubr.msk.f32.vlgmr.msra.gmra.mrb[10].mxu1 %vm134_vm1, %v1257_v38 }
 0xee3   :  { %3125 = vmatpush3.bf16.msra.mxu1 %v3799_v61  ;;  %2972 = vmatprep.mubr.msk.f32.mxu1 %vm3471_vm0, %v3469_v1 }
 0xee4   :  { %3129 = vmatprep.subr.bf16.mxu1 %v3470_v2 }
 0xee6   :  { %2973 = vmatmul.mubr.msk.f32.vlgmr.msra.gmra.mrb[12].mxu1 %vm134_vm1, %v1408_v43 }
 0xee7   :  { %3131 = vmatpush3.bf16.msra.mxu1 %v3799_v61  ;;  %2986 = vmatprep.mubr.msk.f32.mxu1 %vm3471_vm0, %v3469_v1 }
 0xee8   :  { %3140 = vmatprep.subr.bf16.mxu1 %v3470_v2 }
 0xeea   :  { %2987 = vmatmul.mubr.msk.f32.vlgmr.msra.gmra.mrb[14].mxu1 %vm134_vm1, %v1562_v39 }
 0xeeb   :  { %2997 = vmatprep.mubr.msk.f32.mxu1 %vm3471_vm0, %v3469_v1  ;;  %3142 = vmatpush3.bf16.msra.mxu1 %v3863_v5 }
 0xeec   :  { %3143 = vmatprep.subr.bf16.mxu1 %v3470_v2 }
 0xeef   :  { %3145 = vmatpush3.bf16.msra.mxu1 %v3866_v27 }
 0xef0   :  { %3154 = vmatprep.subr.bf16.mxu1 %v3470_v2 }
 0xef2   :  { %2998 = vmatmul.mubr.msk.f32.vlgmr.msra.gmra.mrb[16].mxu1 %vm211_vm2, %v3872_v9 }
 0xef3   :  { %3156 = vmatpush3.bf16.msra.mxu1 %v3863_v5  ;;  %3008 = vmatprep.mubr.msk.f32.mxu1 %vm3471_vm0, %v3469_v1 }
 0xef4   :  { %3157 = vmatprep.subr.bf16.mxu1 %v3470_v2 }
 0xef7   :  { %3159 = vmatpush3.bf16.msra.mxu1 %v3866_v27 }
 0xef8   :  { %3168 = vmatprep.subr.bf16.mxu1 %v3470_v2 }
 0xf4f   :  { %v1792_v59 = vpop.permute.xlu1 %1791 }
 0xf50   :  { %v1794_v49 = vpop.permute.xlu0 %1793 }
 0xf51   :  { %v1795_v12 = vsel %vm211_vm2, %v1792_v59, %v1794_v49 }
 0xf53   :  { %v1811_v58 = vpop.permute.xlu1 %1810 }
 0xfb5   :  { %v1327_v48 = vpop.f32.mrb[10].mxu1 }
 0xfb6   :  { %v1328_v40 = vadd.f32 %v1327_v48, %v132_v21  ;;  %v2960_v41 = vpop.f32.mrb[11].mxu1 }
 0xfb8   :  { %v1402_v42 = vadd.f32 %v1401_v29, %v1328_v40  ;;  %v1556_v45 = vadd.f32 %v1555_v32, %v1328_v40 }
 0xfb9   :  { %v1478_v46 = vpop.f32.mrb[12].mxu1 }
 0xfba   :  { %1406 = vst.msk [vmem:[#allocation3] sm:$0xff] %vm1405_vm4, %v1402_v42  ;;  %v1479_v47 = vadd.f32 %v1478_v46, %v1328_v40  ;;  %1560 = vst.msk [vmem:[#allocation3 + $0x10] sm:$0xff] %vm1405_vm4, %v1556_v45  ;;  %v2974_v44 = vpop.f32.mrb[13].mxu1 }
 0xfbc   :  { %1483 = vst.msk [vmem:[#allocation3 + $0x8] sm:$0xff] %vm1405_vm4, %v1479_v47 }
 0xfbd   :  { %v1632_v50 = vpop.f32.mrb[14].mxu1 }
 0xfbe   :  { %v1633_v52 = vadd.f32 %v1632_v50, %v1328_v40  ;;  %v2988_v53 = vpop.f32.mrb[15].mxu1 }
 0xfc0   :  { %1637 = vst.msk [vmem:[#allocation3 + $0x18] sm:$0xff] %vm1405_vm4, %v1633_v52 }
 0xfc1   :  { %v1788_v54 = vld [vmem:[#allocation3] sm:$0xff] }
 0xfc2   :  { %v1797_v51 = vadd.f32 %v1795_v12, %v1788_v54 }
 0xfc3   :  { %v2018_v39 = vld [vmem:[#allocation3 + $0x8] sm:$0xff] }
 0xfc4   :  { %v2808_v13 = vmul.f32 -1.442695, %v1797_v51 }
 0xfc5   :  { %v1784_v24 = vpop.f32.mrb[16].mxu1 }
 0xfc6   :  { %3277 = vpow2.f32 %v2808_v13  ;;  %v2999_v25 = vpop.f32.mrb[17].mxu1 }
 0xfd0   :  { %v3278_v19 = vpop.eup %3277 }
 0xfd1   :  { %v1801_v56 = vadd.f32 1.0, %v3278_v19 }
 0xfd3   :  { %3279 = vrcp.f32 %v1801_v56 }
 0xfdd   :  { %v3280_v57 = vpop.eup %3279 }
 0xfde   :  { %v1813_v60 = vmul.f32 %v3280_v57, %v1811_v58  ;;  %v1820_v3 = vsub.f32 1.0, %v3280_v57 }
 0xfe0   :  { %1815 = vrot.lane.b32.xlu0 %v1813_v60, %s3472_s9 }
 0xfe4   :  { %1826 = vrot.lane.b32.xlu0 %v3824_v18, %s3473_s1 }
 0xfe8   :  { %1916 = vrot.lane.b32.xlu0 %v3878_v15, %s3474_s15 }
0x1052   :  { %v1816_v61 = vpop.permute.xlu0 %1815 }
0x1053   :  { %v1818_v8 = vadd.f32 %v1816_v61, %v1788_v54 }
0x1055   :  { %3281 = vtanh.f32 %v1818_v8 }
0x1056   :  { %v1827_v18 = vpop.permute.xlu0 %1826 }
0x1057   :  { %v1829_v21 = vmul.f32 %v3280_v57, %v1827_v18 }
0x105a   :  { %v3895_v26 = vpop.permute.xlu0 %1916 }
0x105b   :  { %v1919_v32 = vadd.f32 %v3895_v26, %v1784_v24 }
0x105f   :  { %v3282_v7 = vpop.eup %3281 }
0x1060   :  { %1822 = vrot.lane.b32.xlu1 %v3282_v7, %s3474_s15 }
0x10d2   :  { %v1823_v20 = vpop.permute.xlu1 %1822 }
0x10d3   :  { %v1825_v16 = vmul.f32 %v1823_v20, %v1820_v3 }
0x10d5   :  { %v1830_v22 = vadd.f32 %v1829_v21, %v1825_v16 }
0x10d7   :  { %1832 = vrot.lane.b32.xlu1 %v1830_v22, %s3474_s15 }
0x1149   :  { %v1833_v23 = vpop.permute.xlu1 %1832 }
0x114a   :  { %2809 = vmatmul.mubr.msk.f32.vlgmr.msra.gmra.mrb[18].mxu0 %vm211_vm2, %v1833_v23 }
0x114b   :  { %3163 = vmatpush1.bf16.msra.mxu0 %v3812_v10  ;;  %2123 = vmatprep.mubr.f32.mxu0 %v3469_v1 }
0x114c   :  { %3165 = vmatprep.subr.bf16.mxu0 %v3815_v11 }
0x114f   :  { %3167 = vmatpush1.bf16.msra.mxu0 %v3819_v17 }
0x1150   :  { %3175 = vmatprep.subr.bf16.mxu0 %v3806_v4 }
0x121d   :  { %v1902_v28 = vpop.f32.mrb[18].mxu0 }
0x121e   :  { %2021 = vrot.lane.b32.xlu1 %v1902_v28, %s3473_s1  ;;  %v1904_v29 = vpop.f32.mrb[19].mxu0  ;;  %v1907_v33 = vadd.f32 %v1902_v28, %v3878_v15 }
0x121f   :  { %v2034_v31 = vadd.f32 %v1904_v29, %v3840_v35  ;;  %2023 = vrot.lane.b32.xlu0 %v1904_v29, %s3473_s1 }
0x1220   :  { %v1908_v34 = vadd.f32 %v1907_v33, %v1784_v24 }
0x1222   :  { %2036 = vrot.lane.b32.xlu1 %v2034_v31, %s3474_s15  ;;  %v2810_v36 = vmul.f32 -1.442695, %v1908_v34  ;;  %v2235_v31 = vld [vmem:[#allocation3 + $0x10] sm:$0xff] }
0x1223   :  { %1921 = vrot.lane.b32.xlu0 %v1919_v32, %s3472_s9 }
0x1224   :  { %3283 = vpow2.f32 %v2810_v36 }
0x122e   :  { %v3284_v30 = vpop.eup %3283 }
0x122f   :  { %v1912_v37 = vadd.f32 1.0, %v3284_v30 }
0x1231   :  { %3285 = vrcp.f32 %v1912_v37 }
0x123b   :  { %v3286_v41 = vpop.eup %3285 }
0x123c   :  { %v1931_v61 = vsub.f32 1.0, %v3286_v41 }
0x1290   :  { %v2022_v38 = vpop.permute.xlu1 %2021 }
0x1291   :  { %v2024_v43 = vpop.permute.xlu0 %2023 }
0x1292   :  { %v2025_v48 = vsel %vm211_vm2, %v2022_v38, %v2024_v43 }
0x1293   :  { %v2027_v40 = vadd.f32 %v2025_v48, %v2018_v39 }
0x1294   :  { %v2037_v50 = vpop.permute.xlu1 %2036 }
0x1295   :  { %v2812_v42 = vmul.f32 -1.442695, %v2027_v40  ;;  %v1922_v45 = vpop.permute.xlu0 %1921 }
0x1296   :  { %v1924_v46 = vmul.f32 %v3286_v41, %v1922_v45 }
0x1297   :  { %3287 = vpow2.f32 %v2812_v42 }
0x1298   :  { %1926 = vrot.lane.b32.xlu0 %v1924_v46, %s3472_s9 }
0x12a1   :  { %v3288_v47 = vpop.eup %3287 }
0x12a2   :  { %v2031_v44 = vadd.f32 1.0, %v3288_v47 }
0x12a4   :  { %3289 = vrcp.f32 %v2031_v44 }
0x12ae   :  { %v3290_v49 = vpop.eup %3289 }
0x12af   :  { %v2039_v52 = vmul.f32 %v3290_v49, %v2037_v50  ;;  %v2046_v19 = vsub.f32 1.0, %v3290_v49  ;;  %v2052_v57 = vmul.f32 %v3290_v49, %v1830_v22 }
0x12b1   :  { %2041 = vrot.lane.b32.xlu1 %v2039_v52, %s3472_s9 }
0x130a   :  { %v1927_v59 = vpop.permute.xlu0 %1926 }
0x130b   :  { %v1929_v53 = vadd.f32 %v1927_v59, %v1907_v33 }
0x130d   :  { %3291 = vtanh.f32 %v1929_v53 }
0x1317   :  { %v3292_v12 = vpop.eup %3291 }
0x1318   :  { %1933 = vrot.lane.b32.xlu0 %v3292_v12, %s3474_s15 }
0x1323   :  { %v2042_v54 = vpop.permute.xlu1 %2041 }
0x1324   :  { %v2044_v51 = vadd.f32 %v2042_v54, %v2018_v39 }
0x1326   :  { %3293 = vtanh.f32 %v2044_v51 }
0x1330   :  { %v3294_v13 = vpop.eup %3293 }
0x1331   :  { %2048 = vrot.lane.b32.xlu1 %v3294_v13, %s3474_s15 }
0x1335   :  { %1937 = vrot.lane.b32.xlu1 %v3872_v9, %s3473_s1 }
0x138a   :  { %v1934_v60 = vpop.permute.xlu0 %1933 }
0x138b   :  { %v1936_v63 = vmul.f32 %v1934_v60, %v1931_v61 }
0x13a3   :  { %v2049_v56 = vpop.permute.xlu1 %2048 }
0x13a4   :  { %v2051_v58 = vmul.f32 %v2049_v56, %v2046_v19 }
0x13a6   :  { %v3911_v8 = vadd.f32 %v2052_v57, %v2051_v58 }
0x13a7   :  { %v1938_v62 = vpop.permute.xlu1 %1937 }
0x13a8   :  { %v1940_v0 = vmul.f32 %v3286_v41, %v1938_v62  ;;  %2055 = vrot.lane.b32.xlu0 %v3911_v8, %s3474_s15 }
0x13aa   :  { %v3915_v6 = vadd.f32 %v1940_v0, %v1936_v63 }
0x13ac   :  { %1943 = vrot.lane.b32.xlu1 %v3915_v6, %s3474_s15 }
0x141a   :  { %v2056_v7 = vpop.permute.xlu0 %2055 }
0x141b   :  { %2813 = vmatmul.mubr.msk.f32.vlgmr.msra.gmra.mrb[20].mxu0 %vm211_vm2, %v2056_v7 }
0x141c   :  { %3177 = vmatpush1.bf16.msra.mxu0 %v3812_v10  ;;  %2340 = vmatprep.mubr.f32.mxu0 %v3469_v1 }
0x141d   :  { %3179 = vmatprep.subr.bf16.mxu0 %v3815_v11 }
0x141e   :  { %v1944_v9 = vpop.permute.xlu1 %1943 }
0x141f   :  { %3009 = vmatmul.mubr.msk.f32.vlgmr.msra.gmra.mrb[18].mxu1 %vm211_vm2, %v1944_v9 }
0x1420   :  { %3170 = vmatpush3.bf16.msra.mxu1 %v3863_v5  ;;  %3019 = vmatprep.mubr.msk.f32.mxu1 %vm3471_vm0, %v3469_v1 }
0x1421   :  { %3171 = vmatprep.subr.bf16.mxu1 %v3470_v2  ;;  %3181 = vmatpush1.bf16.msra.mxu0 %v3819_v17 }
0x1422   :  { %3189 = vmatprep.subr.bf16.mxu0 %v3806_v4 }
0x1424   :  { %3173 = vmatpush3.bf16.msra.mxu1 %v3866_v27 }
0x1425   :  { %3182 = vmatprep.subr.bf16.mxu1 %v3470_v2 }
0x14ee   :  { %v2125_v14 = vpop.f32.mrb[20].mxu0 }
0x14ef   :  { %2238 = vrot.lane.b32.xlu0 %v2125_v14, %s3473_s1  ;;  %v2127_v18 = vpop.f32.mrb[21].mxu0  ;;  %v2130_v4 = vadd.f32 %v2125_v14, %v3878_v15 }
0x14f0   :  { %2240 = vrot.lane.b32.xlu1 %v2127_v18, %s3473_s1  ;;  %v2251_v3 = vadd.f32 %v2127_v18, %v3840_v35 }
0x14f2   :  { %v3935_v20 = vpop.f32.mrb[18].mxu1 }
0x14f3   :  { %v2138_v21 = vadd.f32 %v3935_v20, %v3895_v26  ;;  %v3010_v16 = vpop.f32.mrb[19].mxu1  ;;  %v2131_v22 = vadd.f32 %v2130_v4, %v3935_v20 }
0x14f4   :  { %2253 = vrot.lane.b32.xlu1 %v2251_v3, %s3474_s15  ;;  %v2452_v3 = vld [vmem:[#allocation3 + $0x18] sm:$0xff] }
0x14f5   :  { %2140 = vrot.lane.b32.xlu0 %v2138_v21, %s3472_s9  ;;  %v2814_v23 = vmul.f32 -1.442695, %v2131_v22 }
0x14f7   :  { %3295 = vpow2.f32 %v2814_v23 }
0x1501   :  { %v3296_v24 = vpop.eup %3295 }
0x1502   :  { %v2135_v25 = vadd.f32 1.0, %v3296_v24 }
0x1504   :  { %3297 = vrcp.f32 %v2135_v25 }
0x150e   :  { %v3298_v36 = vpop.eup %3297 }
0x150f   :  { %v2150_v49 = vsub.f32 1.0, %v3298_v36  ;;  %v2156_v52 = vmul.f32 %v3298_v36, %v3915_v6 }
0x1561   :  { %v2239_v28 = vpop.permute.xlu0 %2238 }
0x1562   :  { %v2241_v29 = vpop.permute.xlu1 %2240 }
0x1563   :  { %v2242_v32 = vsel %vm211_vm2, %v2239_v28, %v2241_v29 }
0x1564   :  { %v2244_v33 = vadd.f32 %v2242_v32, %v2235_v31 }
0x1566   :  { %v2816_v34 = vmul.f32 -1.442695, %v2244_v33  ;;  %v2254_v48 = vpop.permute.xlu1 %2253 }
0x1567   :  { %v2141_v30 = vpop.permute.xlu0 %2140 }
0x1568   :  { %3299 = vpow2.f32 %v2816_v34  ;;  %v2143_v37 = vmul.f32 %v3298_v36, %v2141_v30 }
0x156a   :  { %2145 = vrot.lane.b32.xlu0 %v2143_v37, %s3472_s9 }
0x1572   :  { %v3300_v38 = vpop.eup %3299 }
0x1573   :  { %v2248_v43 = vadd.f32 1.0, %v3300_v38 }
0x1575   :  { %3301 = vrcp.f32 %v2248_v43 }
0x157f   :  { %v3302_v39 = vpop.eup %3301 }
0x1580   :  { %v2256_v40 = vmul.f32 %v3302_v39, %v2254_v48  ;;  %v2263_v12 = vsub.f32 1.0, %v3302_v39  ;;  %v2269_v51 = vmul.f32 %v3302_v39, %v3911_v8 }
0x1582   :  { %2258 = vrot.lane.b32.xlu1 %v2256_v40, %s3472_s9 }
0x15dc   :  { %v2146_v41 = vpop.permute.xlu0 %2145 }
0x15dd   :  { %v2148_v42 = vadd.f32 %v2146_v41, %v2130_v4 }
0x15df   :  { %3303 = vtanh.f32 %v2148_v42 }
0x15e9   :  { %v3304_v45 = vpop.eup %3303 }
0x15ea   :  { %2152 = vrot.lane.b32.xlu0 %v3304_v45, %s3474_s15 }
0x15f4   :  { %v2259_v46 = vpop.permute.xlu1 %2258 }
0x15f5   :  { %v2261_v47 = vadd.f32 %v2259_v46, %v2235_v31 }
0x15f7   :  { %3305 = vtanh.f32 %v2261_v47 }
0x1601   :  { %v3306_v44 = vpop.eup %3305 }
0x1602   :  { %2265 = vrot.lane.b32.xlu1 %v3306_v44, %s3474_s15 }
0x165c   :  { %v2153_v50 = vpop.permute.xlu0 %2152 }
0x165d   :  { %v2155_v59 = vmul.f32 %v2153_v50, %v2150_v49 }
0x165f   :  { %v3949_v53 = vadd.f32 %v2156_v52, %v2155_v59 }
0x1661   :  { %2159 = vrot.lane.b32.xlu0 %v3949_v53, %s3474_s15 }
0x1674   :  { %v2266_v54 = vpop.permute.xlu1 %2265 }
0x1675   :  { %v2268_v13 = vmul.f32 %v2266_v54, %v2263_v12 }
0x1677   :  { %v3954_v19 = vadd.f32 %v2269_v51, %v2268_v13 }
0x1679   :  { %2272 = vrot.lane.b32.xlu1 %v3954_v19, %s3474_s15 }
0x16d3   :  { %v2160_v56 = vpop.permute.xlu0 %2159 }
0x16d4   :  { %3020 = vmatmul.mubr.msk.f32.vlgmr.msra.gmra.mrb[20].mxu1 %vm211_vm2, %v2160_v56 }
0x16d5   :  { %3184 = vmatpush3.bf16.msra.mxu1 %v3863_v5  ;;  %3030 = vmatprep.mubr.msk.f32.mxu1 %vm3471_vm0, %v3469_v1 }
0x16d6   :  { %3185 = vmatprep.subr.bf16.mxu1 %v3470_v2 }
0x16d9   :  { %3187 = vmatpush3.bf16.msra.mxu1 %v3866_v27 }
0x16da   :  { %3196 = vmatprep.subr.bf16.mxu1 %v3470_v2 }
0x16eb   :  { %v2273_v57 = vpop.permute.xlu1 %2272 }
0x16ec   :  { %2817 = vmatmul.mubr.msk.f32.vlgmr.msra.gmra.mrb[22].mxu0 %vm211_vm2, %v2273_v57 }
0x16ed   :  { %3191 = vmatpush1.bf16.msra.mxu0 %v3812_v10  ;;  %2557 = vmatprep.mubr.f32.mxu0 %v3469_v1 }
0x16ee   :  { %3193 = vmatprep.subr.bf16.mxu0 %v3815_v11 }
0x16f1   :  { %3195 = vmatpush1.bf16.msra.mxu0 %v3819_v17 }
0x17a7   :  { %v3970_v58 = vpop.f32.mrb[20].mxu1 }
0x17a8   :  { %v2355_v60 = vadd.f32 %v3970_v58, %v3895_v26  ;;  %v3021_v61 = vpop.f32.mrb[21].mxu1 }
0x17aa   :  { %2357 = vrot.lane.b32.xlu0 %v2355_v60, %s3472_s9 }
0x17bf   :  { %v2342_v8 = vpop.f32.mrb[22].mxu0 }
0x17c0   :  { %2455 = vrot.lane.b32.xlu1 %v2342_v8, %s3473_s1  ;;  %v2344_v62 = vpop.f32.mrb[23].mxu0  ;;  %v2347_v11 = vadd.f32 %v2342_v8, %v3878_v15 }
0x17c1   :  { %v2468_v10 = vadd.f32 %v2344_v62, %v3840_v35  ;;  %2457 = vrot.lane.b32.xlu0 %v2344_v62, %s3473_s1 }
0x17c2   :  { %v2348_v17 = vadd.f32 %v2347_v11, %v3970_v58 }
0x17c4   :  { %2470 = vrot.lane.b32.xlu1 %v2468_v10, %s3474_s15  ;;  %v2818_v63 = vmul.f32 -1.442695, %v2348_v17 }
0x17c6   :  { %3307 = vpow2.f32 %v2818_v63 }
0x17d0   :  { %v3308_v0 = vpop.eup %3307 }
0x17d1   :  { %v2352_v6 = vadd.f32 1.0, %v3308_v0 }
0x17d3   :  { %3309 = vrcp.f32 %v2352_v6 }
0x17dd   :  { %v3310_v7 = vpop.eup %3309 }
0x17de   :  { %v2367_v30 = vsub.f32 1.0, %v3310_v7  ;;  %v2373_v38 = vmul.f32 %v3310_v7, %v3949_v53 }
0x181c   :  { %v2358_v9 = vpop.permute.xlu0 %2357 }
0x181d   :  { %v2360_v14 = vmul.f32 %v3310_v7, %v2358_v9 }
0x181f   :  { %2362 = vrot.lane.b32.xlu0 %v2360_v14, %s3472_s9 }
0x1832   :  { %v2456_v18 = vpop.permute.xlu1 %2455 }
0x1833   :  { %v2458_v35 = vpop.permute.xlu0 %2457 }
0x1834   :  { %v2459_v21 = vsel %vm211_vm2, %v2456_v18, %v2458_v35 }
0x1835   :  { %v2461_v16 = vadd.f32 %v2459_v21, %v2452_v3 }
0x1836   :  { %v2471_v25 = vpop.permute.xlu1 %2470 }
0x1837   :  { %v2820_v4 = vmul.f32 -1.442695, %v2461_v16 }
0x1839   :  { %3311 = vpow2.f32 %v2820_v4 }
0x1843   :  { %v3312_v22 = vpop.eup %3311 }
0x1844   :  { %v2465_v23 = vadd.f32 1.0, %v3312_v22 }
0x1846   :  { %3313 = vrcp.f32 %v2465_v23 }
0x1850   :  { %v3314_v24 = vpop.eup %3313 }
0x1851   :  { %v2473_v28 = vmul.f32 %v3314_v24, %v2471_v25  ;;  %v2480_v48 = vsub.f32 1.0, %v3314_v24  ;;  %v2486_v41 = vmul.f32 %v3314_v24, %v3954_v19 }
0x1853   :  { %2475 = vrot.lane.b32.xlu1 %v2473_v28, %s3472_s9 }
0x1891   :  { %v2363_v29 = vpop.permute.xlu0 %2362 }
0x1892   :  { %v2365_v31 = vadd.f32 %v2363_v29, %v2347_v11 }
0x1894   :  { %3315 = vtanh.f32 %v2365_v31 }
0x189e   :  { %v3316_v32 = vpop.eup %3315 }
0x189f   :  { %2369 = vrot.lane.b32.xlu0 %v3316_v32, %s3474_s15 }
0x18c5   :  { %v2476_v33 = vpop.permute.xlu1 %2475 }
0x18c6   :  { %v2478_v34 = vadd.f32 %v2476_v33, %v2452_v3 }
0x18c8   :  { %3317 = vtanh.f32 %v2478_v34 }
0x18d2   :  { %v3318_v36 = vpop.eup %3317 }
0x18d3   :  { %2482 = vrot.lane.b32.xlu1 %v3318_v36, %s3474_s15 }
0x1911   :  { %v2370_v37 = vpop.permute.xlu0 %2369 }
0x1912   :  { %v2372_v43 = vmul.f32 %v2370_v37, %v2367_v30 }
0x1914   :  { %v2374_v39 = vadd.f32 %v2373_v38, %v2372_v43 }
0x1916   :  { %2376 = vrot.lane.b32.xlu0 %v2374_v39, %s3474_s15 }
0x1945   :  { %v2483_v40 = vpop.permute.xlu1 %2482 }
0x1946   :  { %v2485_v42 = vmul.f32 %v2483_v40, %v2480_v48 }
0x1948   :  { %v2487_v45 = vadd.f32 %v2486_v41, %v2485_v42 }
0x194a   :  { %2489 = vrot.lane.b32.xlu1 %v2487_v45, %s3474_s15 }
0x1988   :  { %v2377_v46 = vpop.permute.xlu0 %2376 }
0x1989   :  { %3031 = vmatmul.mubr.msk.f32.vlgmr.msra.gmra.mrb[22].mxu1 %vm211_vm2, %v2377_v46 }
0x198a   :  { %3198 = vmatpush3.bf16.msra.mxu1 %v3863_v5  ;;  %3041 = vmatprep.mubr.msk.f32.mxu1 %vm3471_vm0, %v3469_v1 }
0x198b   :  { %3199 = vmatprep.subr.bf16.mxu1 %v3470_v2 }
0x198e   :  { %3201 = vmatpush3.bf16.msra.mxu1 %v3866_v27 }
0x19bc   :  { %v2490_v47 = vpop.permute.xlu1 %2489 }
0x19bd   :  { %2821 = vmatmul.mubr.msk.f32.vlgmr.msra.gmra.mrb[24].mxu0 %vm211_vm2, %v2490_v47 }
0x1a5c   :  { %v2446_v44 = vpop.f32.mrb[22].mxu1 }
0x1a5d   :  { %v2571_v49 = vadd.f32 %v2446_v44, %v3895_v26  ;;  %v3032_v50 = vpop.f32.mrb[23].mxu1 }
0x1a5f   :  { %2573 = vrot.lane.b32.xlu0 %v2571_v49, %s3472_s9 }
0x1a90   :  { %v2559_v52 = vpop.f32.mrb[24].mxu0 }
0x1a91   :  { %v2561_v59 = vpop.f32.mrb[25].mxu0  ;;  %v2563_v5 = vadd.f32 %v2559_v52, %v3878_v15 }
0x1a93   :  { %v2564_v53 = vadd.f32 %v2563_v5, %v2446_v44 }
0x1a95   :  { %v2822_v12 = vmul.f32 -1.442695, %v2564_v53 }
0x1a97   :  { %3319 = vpow2.f32 %v2822_v12 }
0x1aa1   :  { %v3320_v1 = vpop.eup %3319 }
0x1aa2   :  { %v2568_v2 = vadd.f32 1.0, %v3320_v1 }
0x1aa4   :  { %3321 = vrcp.f32 %v2568_v2 }
0x1aae   :  { %v3322_v27 = vpop.eup %3321 }
0x1aaf   :  { %v2583_v15 = vsub.f32 1.0, %v3322_v27  ;;  %v2589_v57 = vmul.f32 %v3322_v27, %v2374_v39 }
0x1ad1   :  { %v2574_v54 = vpop.permute.xlu0 %2573 }
0x1ad2   :  { %v2576_v51 = vmul.f32 %v3322_v27, %v2574_v54 }
0x1ad4   :  { %2578 = vrot.lane.b32.xlu1 %v2576_v51, %s3472_s9 }
0x1b46   :  { %v2579_v13 = vpop.permute.xlu1 %2578 }
0x1b47   :  { %v2581_v26 = vadd.f32 %v2579_v13, %v2563_v5 }
0x1b49   :  { %3323 = vtanh.f32 %v2581_v26 }
0x1b53   :  { %v3324_v19 = vpop.eup %3323 }
0x1b54   :  { %2585 = vrot.lane.b32.xlu0 %v3324_v19, %s3474_s15 }
0x1b58   :  { %2673 = vrot.lane.b32.xlu0 %v3717_v55, %s3476_s2 }
0x1bc6   :  { %v2586_v56 = vpop.permute.xlu0 %2585 }
0x1bc7   :  { %v2588_v60 = vmul.f32 %v2586_v56, %v2583_v15 }
0x1bc9   :  { %v2590_v61 = vadd.f32 %v2589_v57, %v2588_v60 }
0x1bca   :  { %v2674_v8 = vpop.permute.xlu0 %2673 }
0x1bcb   :  { %2592 = vrot.lane.b32.xlu1 %v2590_v61, %s3474_s15  ;;  %v2677_v62 = vadd.f32 %v2674_v8, %v3970_v58  ;;  %v2678_v11 = vadd.f32 %v2674_v8, %v2446_v44  ;;  %v2676_v55 = vadd.f32 %v2674_v8, %v3935_v20 }
0x1bcd   :  { %v2684_v10 = vsel %vm2680_vm5, %v2677_v62, -inf  ;;  %v2687_v17 = vsel %vm2680_vm5, %v2678_v11, -inf  ;;  %v2681_v63 = vsel %vm2680_vm5, %v2676_v55, -inf }
0x1bce   :  { %2685 = vmax.xlane.f32.xlu0 %v2684_v10 }
0x1bd2   :  { %2688 = vmax.xlane.f32.xlu0 %v2687_v17 }
0x1bef   :  { %2682 = vmax.xlane.f32.xlu1 %v2681_v63 }
0x1c3d   :  { %v2593_v0 = vpop.permute.xlu1 %2592 }
0x1c3e   :  { %3042 = vmatmul.mubr.msk.f32.vlgmr.msra.gmra.mrb[24].mxu1 %vm211_vm2, %v2593_v0 }
0x1c5b   :  { %v2686_v14 = vpop.xlane.xlu0 %2685 }
0x1c5c   :  { %v2694_v21 = vsub.f32 %v2677_v62, %v2686_v14 }
0x1c5e   :  { %v2699_v4 = vmul.f32 1.442695, %v2694_v21 }
0x1c5f   :  { %v2689_v16 = vpop.xlane.xlu0 %2688 }
0x1c60   :  { %v2695_v22 = vsub.f32 %v2678_v11, %v2689_v16 }
0x1c62   :  { %v2701_v23 = vmul.f32 1.442695, %v2695_v22 }
0x1c7c   :  { %v2683_v6 = vpop.xlane.xlu1 %2682 }
0x1c7d   :  { %v2693_v7 = vsub.f32 %v2676_v55, %v2683_v6 }
0x1c7f   :  { %v2697_v9 = vmul.f32 1.442695, %v2693_v7 }
0x1c81   :  { %3325 = vpow2.f32 %v2697_v9 }
0x1c82   :  { %3327 = vpow2.f32 %v2699_v4 }
0x1c83   :  { %3329 = vpow2.f32 %v2701_v23 }
0x1c8b   :  { %v3326_v58 = vpop.eup %3325 }
0x1c8c   :  { %2709 = vrot.lane.b32.xlu0 %v3326_v58, %s3473_s1  ;;  %v3328_v24 = vpop.eup %3327 }
0x1c8d   :  { %v3330_v25 = vpop.eup %3329 }
0x1cfe   :  { %v2710_v28 = vpop.permute.xlu0 %2709 }
0x1cff   :  { %v2722_v29 = vsel %vm2721_vm6, %v2710_v28, 0.0 }
0x1d11   :  { %v2662_v18 = vpop.f32.mrb[24].mxu1 }
0x1d12   :  { %v2679_v35 = vadd.f32 %v2674_v8, %v2662_v18  ;;  %v3043_v3 = vpop.f32.mrb[25].mxu1 }
0x1d14   :  { %v2690_v20 = vsel %vm2680_vm5, %v2679_v35, -inf }
0x1d15   :  { %2691 = vmax.xlane.f32.xlu1 %v2690_v20 }
0x1d26   :  { %2711 = vrot.lane.b32.xlu1 %v3328_v24, %s3473_s1 }
0x1d2a   :  { %2713 = vrot.lane.b32.xlu1 %v3330_v25, %s3473_s1 }
0x1d4e   :  { %2723 = vadd.xlane.f32.xlu1 %v2722_v29 }
0x1da2   :  { %v2692_v31 = vpop.xlane.xlu1 %2691 }
0x1da3   :  { %v2696_v32 = vsub.f32 %v2679_v35, %v2692_v31 }
0x1da5   :  { %v2703_v33 = vmul.f32 1.442695, %v2696_v32 }
0x1da6   :  { %v2712_v36 = vpop.permute.xlu1 %2711 }
0x1da7   :  { %3331 = vpow2.f32 %v2703_v33  ;;  %v2725_v30 = vsel %vm2721_vm6, %v2712_v36, 0.0 }
0x1daa   :  { %v2714_v37 = vpop.permute.xlu1 %2713 }
0x1dab   :  { %v2728_v38 = vsel %vm2721_vm6, %v2714_v37, 0.0 }
0x1db1   :  { %v3332_v34 = vpop.eup %3331 }
0x1db2   :  { %2715 = vrot.lane.b32.xlu0 %v3332_v34, %s3473_s1 }
0x1dd1   :  { %2726 = vadd.xlane.f32.xlu0 %v2725_v30 }
0x1dd5   :  { %2729 = vadd.xlane.f32.xlu0 %v2728_v38 }
0x1ddb   :  { %v2724_v43 = vpop.xlane.xlu1 %2723 }
0x1ddc   :  { %3333 = vrcp.f32 %v2724_v43 }
0x1de6   :  { %v3334_v39 = vpop.eup %3333 }
0x1de7   :  { %v2735_v48 = vmul.f32 %v3334_v39, %v3326_v58 }
0x1deb   :  { %2746 = vrot.lane.b32.xlu0 %v2735_v48, %s3473_s1 }
0x1e24   :  { %v2716_v40 = vpop.permute.xlu0 %2715 }
0x1e25   :  { %v2731_v41 = vsel %vm2721_vm6, %v2716_v40, 0.0 }
0x1e26   :  { %2732 = vadd.xlane.f32.xlu1 %v2731_v41 }
0x1e5e   :  { %v2727_v42 = vpop.xlane.xlu0 %2726 }
0x1e5f   :  { %3335 = vrcp.f32 %v2727_v42 }
0x1e62   :  { %v2730_v45 = vpop.xlane.xlu0 %2729 }
0x1e63   :  { %3337 = vrcp.f32 %v2730_v45 }
0x1e66   :  { %v2747_v46 = vpop.permute.xlu0 %2746 }
0x1e67   :  { %2758 = vst.msk [vmem:[#allocation13] sm:$0xff] %vm2721_vm6, %v2747_v46 }
0x1e69   :  { %v3336_v47 = vpop.eup %3335 }
0x1e6a   :  { %v2737_v44 = vmul.f32 %v3336_v47, %v3328_v24 }
0x1e6c   :  { %2748 = vrot.lane.b32.xlu1 %v2737_v44, %s3473_s1 }
0x1e6d   :  { %v3338_v49 = vpop.eup %3337 }
0x1e6e   :  { %v2739_v50 = vmul.f32 %v3338_v49, %v3330_v25 }
0x1e70   :  { %2750 = vrot.lane.b32.xlu1 %v2739_v50, %s3473_s1 }
0x1eb3   :  { %v2733_v52 = vpop.xlane.xlu1 %2732 }
0x1eb4   :  { %3339 = vrcp.f32 %v2733_v52 }
0x1ebe   :  { %v3340_v59 = vpop.eup %3339 }
0x1ebf   :  { %v2741_v5 = vmul.f32 %v3340_v59, %v3332_v34 }
0x1ec1   :  { %2752 = vrot.lane.b32.xlu0 %v2741_v5, %s3473_s1 }
0x1ede   :  { %v2749_v53 = vpop.permute.xlu1 %2748 }
0x1edf   :  { %2759 = vst.msk [vmem:[#allocation13 + $0x8] sm:$0xff] %vm2721_vm6, %v2749_v53 }
0x1ee2   :  { %v2751_v12 = vpop.permute.xlu1 %2750 }
0x1ee3   :  { %2760 = vst.msk [vmem:[#allocation13 + $0x10] sm:$0xff] %vm2721_vm6, %v2751_v12 }
0x1f33   :  { %v2753_v1 = vpop.permute.xlu0 %2752 }
0x1f34   :  { %2761 = vst.msk [vmem:[#allocation13 + $0x18] sm:$0xff] %vm2721_vm6, %v2753_v1 }
0x1f35   :  { %3440 = shalt.err (!%p3437_p8)
}
0x1f36   :  { %s3441_s22 = scalar_lea.hbm %s4049_s7, 512 }
0x1f37   :  { %p3442_p9 = scmp.ne.s32.totalorder %s4049_s7, %s3441_s22  ;;  %p3445_p10 = scmp.lt.u32.totalorder %s3441_s22, %s4049_s7 }
0x1f39   :  { %p3447_p11 = pnand %p3445_p10, %p3442_p9 }
0x1f3b   :  { %3450 = shalt.err (!%p3447_p11)
}
0x1f3c   :  { %2773 = dma.vmem_to_hbm [thread:$0]  %s2768_s18, 512, %s4049_s7, [#allocation7], %s3461_s13, %s3461_s13, %s3462_s14  }
0x1f3d   :  { %3457 = dma.done.wait [#allocation7], 512  }
0x1f3e   :  { %3458 = vsyncadd [#allocation7], 4294966784 }
0x1f3f   :  { %2777 = vsyncpa [#allocation6], 1 }
0x1f40   :  { %2778 = vsyncpa [#allocation9], 1 }
0x1f41   :  { %2779 = vsyncpa [#allocation12], 1 }
0x1f42   :  { %2780 = vsyncpa [#allocation7], 1 }

</bundles_post_ra>
